<compile_context>
chip_gen: v7x
topology: tpu7x:2x2x1
jax: 0.10.0
libtpu: 0.0.40
codegen_flags: <defaults>
</compile_context>

<pallas_src>
import math
import functools

import numpy as np
import jax
import jax.numpy as jnp
from jax import lax
from jax.experimental import pallas as pl
from jax.experimental.pallas import tpu as pltpu


# ----------------------------- blur kernel setup -----------------------------
def _setup_blur_kernel(k=(1, 3, 3, 1)):
    """_setup_kernel + setup_blur_weights(down=2, is_ref=True) from the module."""
    k = np.asarray(k, dtype=np.float32)
    k2 = k[:, None] * k[None, :]
    k2 = k2 / k2.sum()
    # is_ref=True flips along H/W; symmetric kernel so numerically a no-op,
    # kept for fidelity with the PyTorch module.
    k2 = k2[::-1, ::-1].copy()
    return k2  # (4, 4), float32


# --------------------- fused stride-2 direct-conv kernel ----------------------
def _fused_conv_kernel(x_ref, w_ref, b_ref, o_ref, *, Kc, Ho, Wo):
    """Direct strided conv over a parity-decomposed NHWC input block.

    x_ref: (1, 4, Hh, Wh, Cin)   parity planes, Cin on lanes
    w_ref: (Kc*Kc, Cin, tco)     combined (blur-folded) weights per tap
    b_ref: (1, tco)              bias (f32)
    o_ref: (1, Ho, Wo, tco)      output (f32), Cout-tile on lanes
    """
    Cin = x_ref.shape[-1]
    tco = o_ref.shape[-1]
    # Bias folded into the accumulator init (saves one VALU pass at the end).
    acc = jnp.broadcast_to(b_ref[...].astype(jnp.float32), (Ho * Wo, tco))
    # Static tap loop: Kc*Kc MXU matmuls accumulated in f32.  Every slice start
    # below is a Python int -> unit-stride, statically-offset VMEM access.
    for kh in range(Kc):
        ah, bh = kh // 2, kh % 2
        for kw in range(Kc):
            aw, bw = kw // 2, kw % 2
            pidx = bh * 2 + bw
            xs = x_ref[0, pidx, pl.ds(ah, Ho), pl.ds(aw, Wo), :]  # (Ho, Wo, Cin)
            acc = acc + jnp.dot(
                xs.reshape(Ho * Wo, Cin),
                w_ref[kh * Kc + kw],
                preferred_element_type=jnp.float32,
            )
    o_ref[0] = acc.reshape(Ho, Wo, tco)


# ------------------------------- full forward --------------------------------
@functools.partial(
    jax.jit, static_argnames=("kernel_size", "down", "compute_dtype")
)
def conv2d_downsample(x, weight, bias, blur, *, kernel_size, down=2,
                      compute_dtype=jnp.float32):
    """x: (N, Cin, H, W) NCHW.  weight: (Cout, Cin, K, K).  bias: (Cout,)."""
    N, Cin, H, W = x.shape
    Cout = weight.shape[0]
    K = kernel_size
    blur = jnp.asarray(blur, jnp.float32)
    Kb = blur.shape[0]

    # padding exactly as in Conv2d_Downsample.__init__
    p = Kb - down + (K - 1)
    pad0, pad1 = (p + 1) // 2, p // 2
    Hp, Wp = H + pad0 + pad1, W + pad0 + pad1

    # ---- fold the blur into the conv weights (tiny tensor, plain JAX) ----
    # z = conv_s2(corr(x_pad, blurF), w_scaled)  ==  conv_s2(x_pad, W_comb) with
    # W_comb[o,c,m,n] = sum_{i+a=m, j+b=n} blurF[i,j] * w_scaled[o,c,a,b]
    Kc = K + Kb - 1
    scale = 1.0 / math.sqrt(Cin * K * K)          # EqualizedLR
    w_s = weight.astype(jnp.float32) * scale
    w_comb = jnp.zeros((Cout, Cin, Kc, Kc), jnp.float32)
    for i in range(Kb):
        for j in range(Kb):
            w_comb = w_comb.at[:, :, i:i + K, j:j + K].add(blur[i, j] * w_s)
    # (Kc*Kc, Cin, Cout): contraction dim (Cin) and output dim (Cout) lane-friendly
    w_taps = (w_comb.transpose(2, 3, 1, 0)
                    .reshape(Kc * Kc, Cin, Cout)
                    .astype(compute_dtype))

    # output spatial size (identical to blur-then-conv)
    Ho = (Hp - Kc) // down + 1
    Wo = (Wp - Kc) // down + 1

    # ---- input layout: NCHW -> padded NHWC -> parity planes (N,4,Hh,Wh,Cin) ----
    Hp_e, Wp_e = Hp + (Hp & 1), Wp + (Wp & 1)
    x_nhwc = jnp.pad(x.transpose(0, 2, 3, 1),
                     ((0, 0), (pad0, pad1 + (Hp_e - Hp)),
                      (pad0, pad1 + (Wp_e - Wp)), (0, 0)))
    Hh, Wh = Hp_e // 2, Wp_e // 2
    x_par = (x_nhwc.reshape(N, Hh, 2, Wh, 2, Cin)
                   .transpose(0, 2, 4, 1, 3, 5)     # (N, 2, 2, Hh, Wh, Cin)
                   .reshape(N, 4, Hh, Wh, Cin)
                   .astype(compute_dtype))

    # Cout tiling: lane-dense output blocks + a second parallel grid axis.
    if Cout % 256 == 0:
        tco = 256
    elif Cout % 128 == 0:
        tco = 128
    else:
        tco = Cout
    n_co = Cout // tco

    bias2d = bias.reshape(1, Cout).astype(jnp.float32)

    kern = functools.partial(_fused_conv_kernel, Kc=Kc, Ho=Ho, Wo=Wo)
    out_nhwc = pl.pallas_call(
        kern,
        out_shape=jax.ShapeDtypeStruct((N, Ho, Wo, Cout), jnp.float32),
        grid=(N, n_co),
        in_specs=[
            pl.BlockSpec((1, 4, Hh, Wh, Cin), lambda n, c: (n, 0, 0, 0, 0)),
            pl.BlockSpec((Kc * Kc, Cin, tco), lambda n, c: (0, 0, c)),
            pl.BlockSpec((1, tco), lambda n, c: (0, c)),
        ],
        out_specs=pl.BlockSpec((1, Ho, Wo, tco), lambda n, c: (n, 0, 0, c)),
        compiler_params=pltpu.CompilerParams(
            dimension_semantics=("parallel", "parallel")),
    )(x_par, w_taps, bias2d)

    # module interface is NCHW (PyTorch); single layout pass on the output.
    return out_nhwc.transpose(0, 3, 1, 2)


# ------------------------------ plain-JAX reference --------------------------
def reference(x, weight, bias, blur_np, kernel_size, down=2):
    N, Cin, H, W = x.shape
    K = kernel_size
    Wblur = blur_np.shape[0]
    p = Wblur - down + (K - 1)
    pad0, pad1 = (p + 1) // 2, p // 2
    x_pad = jnp.pad(x, ((0, 0), (0, 0), (pad0, pad1), (pad0, pad1)))
    blur_w = jnp.broadcast_to(
        jnp.asarray(blur_np)[None, None], (Cin, 1, Wblur, Wblur))
    y = lax.conv_general_dilated(
        x_pad, blur_w, (1, 1), "VALID",
        dimension_numbers=("NCHW", "OIHW", "NCHW"), feature_group_count=Cin)
    scale = 1.0 / math.sqrt(Cin * K * K)
    z = lax.conv_general_dilated(
        y, weight * scale, (down, down), "VALID",
        dimension_numbers=("NCHW", "OIHW", "NCHW"))
    return z + bias.reshape(1, -1, 1, 1)


if __name__ == "__main__":
    N, Cin, Cout, H, W, K = 2, 4, 8, 16, 16, 3

    key = jax.random.PRNGKey(0)
    k1, k2, k3 = jax.random.split(key, 3)
    x = jax.random.normal(k1, (N, Cin, H, W), jnp.float32)
    weight = jax.random.normal(k2, (Cout, Cin, K, K), jnp.float32)
    bias = 0.1 * jax.random.normal(k3, (Cout,), jnp.float32)
    blur_np = _setup_blur_kernel([1, 3, 3, 1])

    ref = reference(x, weight, bias, blur_np, K)

    # f32 path: strict correctness of the blur-folded fused kernel.
    out32 = conv2d_downsample(x, weight, bias, blur_np, kernel_size=K,
                              compute_dtype=jnp.float32)
    out32 = jax.block_until_ready(out32)
    assert out32.shape == (N, Cout, H // 2, W // 2), out32.shape
    err32 = float(jnp.max(jnp.abs(out32 - ref)))
    assert err32 < 1e-4, f"f32 mismatch vs reference: {err32}"

    # bf16 MXU path (production config): bf16 inputs, f32 accumulation.
    out16 = conv2d_downsample(x, weight, bias, blur_np, kernel_size=K,
                              compute_dtype=jnp.bfloat16)
    out16 = jax.block_until_ready(out16)
    err16 = float(jnp.max(jnp.abs(out16 - ref)))
    tol16 = 5e-2 * max(1.0, float(jnp.max(jnp.abs(ref))))
    assert err16 < tol16, f"bf16 mismatch vs reference: {err16} (tol {tol16})"

    print("KERNEL_OK")
</pallas_src>

<mosaic_0001>
module attributes {stable_mosaic.version = 11 : i64} {
  func.func @_fused_conv_kernel(%arg0: i32, %arg1: i32, %arg2: memref<1x4x10x10x4xf32, #tpu.memory_space<vmem>>, %arg3: memref<36x4x8xf32, #tpu.memory_space<vmem>>, %arg4: memref<1x8xf32, #tpu.memory_space<vmem>>, %arg5: memref<1x8x8x8xf32, #tpu.memory_space<vmem>>) attributes {dimension_semantics = [#tpu.dimension_semantics<parallel>, #tpu.dimension_semantics<parallel>], iteration_bounds = array<i64: 2, 1>, scalar_prefetch = 0 : i64, scratch_operands = 0 : i64, tpu.core_type = #tpu.core_type<tc>, window_params = [{transform_indices = @transform_0, window_bounds = array<i64: 1, 4, 10, 10, 4>}, {transform_indices = @transform_1, window_bounds = array<i64: 36, 4, 8>}, {transform_indices = @transform_2, window_bounds = array<i64: 1, 8>}, {transform_indices = @transform_3, window_bounds = array<i64: 1, 8, 8, 8>}]} {
    %c0 = arith.constant 0 : index
    %c0_0 = arith.constant 0 : index
    %0 = vector.load %arg4[%c0, %c0_0] : memref<1x8xf32, #tpu.memory_space<vmem>>, vector<1x8xf32>
    %1 = vector.shape_cast %0 : vector<1x8xf32> to vector<1x8xf32>
    %2 = vector.broadcast %1 : vector<1x8xf32> to vector<64x8xf32>
    %c0_1 = arith.constant 0 : index
    %c0_2 = arith.constant 0 : index
    %c0_3 = arith.constant 0 : index
    %c0_4 = arith.constant 0 : index
    %c0_5 = arith.constant 0 : index
    %3 = vector.load %arg2[%c0_1, %c0_2, %c0_3, %c0_4, %c0_5] : memref<1x4x10x10x4xf32, #tpu.memory_space<vmem>>, vector<1x1x8x8x4xf32>
    %4 = vector.shape_cast %3 : vector<1x1x8x8x4xf32> to vector<8x8x4xf32>
    %5 = vector.shape_cast %4 : vector<8x8x4xf32> to vector<64x4xf32>
    %c0_6 = arith.constant 0 : index
    %c0_7 = arith.constant 0 : index
    %c0_8 = arith.constant 0 : index
    %6 = vector.load %arg3[%c0_6, %c0_7, %c0_8] : memref<36x4x8xf32, #tpu.memory_space<vmem>>, vector<1x4x8xf32>
    %7 = vector.shape_cast %6 : vector<1x4x8xf32> to vector<4x8xf32>
    %cst = arith.constant dense<0.000000e+00> : vector<64x8xf32>
    %8 = tpu.matmul %5, %7, %cst {dimension_numbers = #tpu.dot_dimension_numbers<[1], [0], [0], [1], [0, 0, 1, 1], [], []>} : vector<64x4xf32>, vector<4x8xf32>, vector<64x8xf32> -> vector<64x8xf32>
    %9 = arith.addf %2, %8 : vector<64x8xf32>
    %c0_9 = arith.constant 0 : index
    %c1 = arith.constant 1 : index
    %c0_10 = arith.constant 0 : index
    %c0_11 = arith.constant 0 : index
    %c0_12 = arith.constant 0 : index
    %10 = vector.load %arg2[%c0_9, %c1, %c0_10, %c0_11, %c0_12] : memref<1x4x10x10x4xf32, #tpu.memory_space<vmem>>, vector<1x1x8x8x4xf32>
    %11 = vector.shape_cast %10 : vector<1x1x8x8x4xf32> to vector<8x8x4xf32>
    %12 = vector.shape_cast %11 : vector<8x8x4xf32> to vector<64x4xf32>
    %c1_13 = arith.constant 1 : index
    %c0_14 = arith.constant 0 : index
    %c0_15 = arith.constant 0 : index
    %13 = vector.load %arg3[%c1_13, %c0_14, %c0_15] : memref<36x4x8xf32, #tpu.memory_space<vmem>>, vector<1x4x8xf32>
    %14 = vector.shape_cast %13 : vector<1x4x8xf32> to vector<4x8xf32>
    %cst_16 = arith.constant dense<0.000000e+00> : vector<64x8xf32>
    %15 = tpu.matmul %12, %14, %cst_16 {dimension_numbers = #tpu.dot_dimension_numbers<[1], [0], [0], [1], [0, 0, 1, 1], [], []>} : vector<64x4xf32>, vector<4x8xf32>, vector<64x8xf32> -> vector<64x8xf32>
    %16 = arith.addf %9, %15 : vector<64x8xf32>
    %c0_17 = arith.constant 0 : index
    %c0_18 = arith.constant 0 : index
    %c0_19 = arith.constant 0 : index
    %c1_20 = arith.constant 1 : index
    %c0_21 = arith.constant 0 : index
    %17 = vector.load %arg2[%c0_17, %c0_18, %c0_19, %c1_20, %c0_21] : memref<1x4x10x10x4xf32, #tpu.memory_space<vmem>>, vector<1x1x8x8x4xf32>
    %18 = vector.shape_cast %17 : vector<1x1x8x8x4xf32> to vector<8x8x4xf32>
    %19 = vector.shape_cast %18 : vector<8x8x4xf32> to vector<64x4xf32>
    %c2 = arith.constant 2 : index
    %c0_22 = arith.constant 0 : index
    %c0_23 = arith.constant 0 : index
    %20 = vector.load %arg3[%c2, %c0_22, %c0_23] : memref<36x4x8xf32, #tpu.memory_space<vmem>>, vector<1x4x8xf32>
    %21 = vector.shape_cast %20 : vector<1x4x8xf32> to vector<4x8xf32>
    %cst_24 = arith.constant dense<0.000000e+00> : vector<64x8xf32>
    %22 = tpu.matmul %19, %21, %cst_24 {dimension_numbers = #tpu.dot_dimension_numbers<[1], [0], [0], [1], [0, 0, 1, 1], [], []>} : vector<64x4xf32>, vector<4x8xf32>, vector<64x8xf32> -> vector<64x8xf32>
    %23 = arith.addf %16, %22 : vector<64x8xf32>
    %c0_25 = arith.constant 0 : index
    %c1_26 = arith.constant 1 : index
    %c0_27 = arith.constant 0 : index
    %c1_28 = arith.constant 1 : index
    %c0_29 = arith.constant 0 : index
    %24 = vector.load %arg2[%c0_25, %c1_26, %c0_27, %c1_28, %c0_29] : memref<1x4x10x10x4xf32, #tpu.memory_space<vmem>>, vector<1x1x8x8x4xf32>
    %25 = vector.shape_cast %24 : vector<1x1x8x8x4xf32> to vector<8x8x4xf32>
    %26 = vector.shape_cast %25 : vector<8x8x4xf32> to vector<64x4xf32>
    %c3 = arith.constant 3 : index
    %c0_30 = arith.constant 0 : index
    %c0_31 = arith.constant 0 : index
    %27 = vector.load %arg3[%c3, %c0_30, %c0_31] : memref<36x4x8xf32, #tpu.memory_space<vmem>>, vector<1x4x8xf32>
    %28 = vector.shape_cast %27 : vector<1x4x8xf32> to vector<4x8xf32>
    %cst_32 = arith.constant dense<0.000000e+00> : vector<64x8xf32>
    %29 = tpu.matmul %26, %28, %cst_32 {dimension_numbers = #tpu.dot_dimension_numbers<[1], [0], [0], [1], [0, 0, 1, 1], [], []>} : vector<64x4xf32>, vector<4x8xf32>, vector<64x8xf32> -> vector<64x8xf32>
    %30 = arith.addf %23, %29 : vector<64x8xf32>
    %c0_33 = arith.constant 0 : index
    %c0_34 = arith.constant 0 : index
    %c0_35 = arith.constant 0 : index
    %c2_36 = arith.constant 2 : index
    %c0_37 = arith.constant 0 : index
    %31 = vector.load %arg2[%c0_33, %c0_34, %c0_35, %c2_36, %c0_37] : memref<1x4x10x10x4xf32, #tpu.memory_space<vmem>>, vector<1x1x8x8x4xf32>
    %32 = vector.shape_cast %31 : vector<1x1x8x8x4xf32> to vector<8x8x4xf32>
    %33 = vector.shape_cast %32 : vector<8x8x4xf32> to vector<64x4xf32>
    %c4 = arith.constant 4 : index
    %c0_38 = arith.constant 0 : index
    %c0_39 = arith.constant 0 : index
    %34 = vector.load %arg3[%c4, %c0_38, %c0_39] : memref<36x4x8xf32, #tpu.memory_space<vmem>>, vector<1x4x8xf32>
    %35 = vector.shape_cast %34 : vector<1x4x8xf32> to vector<4x8xf32>
    %cst_40 = arith.constant dense<0.000000e+00> : vector<64x8xf32>
    %36 = tpu.matmul %33, %35, %cst_40 {dimension_numbers = #tpu.dot_dimension_numbers<[1], [0], [0], [1], [0, 0, 1, 1], [], []>} : vector<64x4xf32>, vector<4x8xf32>, vector<64x8xf32> -> vector<64x8xf32>
    %37 = arith.addf %30, %36 : vector<64x8xf32>
    %c0_41 = arith.constant 0 : index
    %c1_42 = arith.constant 1 : index
    %c0_43 = arith.constant 0 : index
    %c2_44 = arith.constant 2 : index
    %c0_45 = arith.constant 0 : index
    %38 = vector.load %arg2[%c0_41, %c1_42, %c0_43, %c2_44, %c0_45] : memref<1x4x10x10x4xf32, #tpu.memory_space<vmem>>, vector<1x1x8x8x4xf32>
    %39 = vector.shape_cast %38 : vector<1x1x8x8x4xf32> to vector<8x8x4xf32>
    %40 = vector.shape_cast %39 : vector<8x8x4xf32> to vector<64x4xf32>
    %c5 = arith.constant 5 : index
    %c0_46 = arith.constant 0 : index
    %c0_47 = arith.constant 0 : index
    %41 = vector.load %arg3[%c5, %c0_46, %c0_47] : memref<36x4x8xf32, #tpu.memory_space<vmem>>, vector<1x4x8xf32>
    %42 = vector.shape_cast %41 : vector<1x4x8xf32> to vector<4x8xf32>
    %cst_48 = arith.constant dense<0.000000e+00> : vector<64x8xf32>
    %43 = tpu.matmul %40, %42, %cst_48 {dimension_numbers = #tpu.dot_dimension_numbers<[1], [0], [0], [1], [0, 0, 1, 1], [], []>} : vector<64x4xf32>, vector<4x8xf32>, vector<64x8xf32> -> vector<64x8xf32>
    %44 = arith.addf %37, %43 : vector<64x8xf32>
    %c0_49 = arith.constant 0 : index
    %c2_50 = arith.constant 2 : index
    %c0_51 = arith.constant 0 : index
    %c0_52 = arith.constant 0 : index
    %c0_53 = arith.constant 0 : index
    %45 = vector.load %arg2[%c0_49, %c2_50, %c0_51, %c0_52, %c0_53] : memref<1x4x10x10x4xf32, #tpu.memory_space<vmem>>, vector<1x1x8x8x4xf32>
    %46 = vector.shape_cast %45 : vector<1x1x8x8x4xf32> to vector<8x8x4xf32>
    %47 = vector.shape_cast %46 : vector<8x8x4xf32> to vector<64x4xf32>
    %c6 = arith.constant 6 : index
    %c0_54 = arith.constant 0 : index
    %c0_55 = arith.constant 0 : index
    %48 = vector.load %arg3[%c6, %c0_54, %c0_55] : memref<36x4x8xf32, #tpu.memory_space<vmem>>, vector<1x4x8xf32>
    %49 = vector.shape_cast %48 : vector<1x4x8xf32> to vector<4x8xf32>
    %cst_56 = arith.constant dense<0.000000e+00> : vector<64x8xf32>
    %50 = tpu.matmul %47, %49, %cst_56 {dimension_numbers = #tpu.dot_dimension_numbers<[1], [0], [0], [1], [0, 0, 1, 1], [], []>} : vector<64x4xf32>, vector<4x8xf32>, vector<64x8xf32> -> vector<64x8xf32>
    %51 = arith.addf %44, %50 : vector<64x8xf32>
    %c0_57 = arith.constant 0 : index
    %c3_58 = arith.constant 3 : index
    %c0_59 = arith.constant 0 : index
    %c0_60 = arith.constant 0 : index
    %c0_61 = arith.constant 0 : index
    %52 = vector.load %arg2[%c0_57, %c3_58, %c0_59, %c0_60, %c0_61] : memref<1x4x10x10x4xf32, #tpu.memory_space<vmem>>, vector<1x1x8x8x4xf32>
    %53 = vector.shape_cast %52 : vector<1x1x8x8x4xf32> to vector<8x8x4xf32>
    %54 = vector.shape_cast %53 : vector<8x8x4xf32> to vector<64x4xf32>
    %c7 = arith.constant 7 : index
    %c0_62 = arith.constant 0 : index
    %c0_63 = arith.constant 0 : index
    %55 = vector.load %arg3[%c7, %c0_62, %c0_63] : memref<36x4x8xf32, #tpu.memory_space<vmem>>, vector<1x4x8xf32>
    %56 = vector.shape_cast %55 : vector<1x4x8xf32> to vector<4x8xf32>
    %cst_64 = arith.constant dense<0.000000e+00> : vector<64x8xf32>
    %57 = tpu.matmul %54, %56, %cst_64 {dimension_numbers = #tpu.dot_dimension_numbers<[1], [0], [0], [1], [0, 0, 1, 1], [], []>} : vector<64x4xf32>, vector<4x8xf32>, vector<64x8xf32> -> vector<64x8xf32>
    %58 = arith.addf %51, %57 : vector<64x8xf32>
    %c0_65 = arith.constant 0 : index
    %c2_66 = arith.constant 2 : index
    %c0_67 = arith.constant 0 : index
    %c1_68 = arith.constant 1 : index
    %c0_69 = arith.constant 0 : index
    %59 = vector.load %arg2[%c0_65, %c2_66, %c0_67, %c1_68, %c0_69] : memref<1x4x10x10x4xf32, #tpu.memory_space<vmem>>, vector<1x1x8x8x4xf32>
    %60 = vector.shape_cast %59 : vector<1x1x8x8x4xf32> to vector<8x8x4xf32>
    %61 = vector.shape_cast %60 : vector<8x8x4xf32> to vector<64x4xf32>
    %c8 = arith.constant 8 : index
    %c0_70 = arith.constant 0 : index
    %c0_71 = arith.constant 0 : index
    %62 = vector.load %arg3[%c8, %c0_70, %c0_71] : memref<36x4x8xf32, #tpu.memory_space<vmem>>, vector<1x4x8xf32>
    %63 = vector.shape_cast %62 : vector<1x4x8xf32> to vector<4x8xf32>
    %cst_72 = arith.constant dense<0.000000e+00> : vector<64x8xf32>
    %64 = tpu.matmul %61, %63, %cst_72 {dimension_numbers = #tpu.dot_dimension_numbers<[1], [0], [0], [1], [0, 0, 1, 1], [], []>} : vector<64x4xf32>, vector<4x8xf32>, vector<64x8xf32> -> vector<64x8xf32>
    %65 = arith.addf %58, %64 : vector<64x8xf32>
    %c0_73 = arith.constant 0 : index
    %c3_74 = arith.constant 3 : index
    %c0_75 = arith.constant 0 : index
    %c1_76 = arith.constant 1 : index
    %c0_77 = arith.constant 0 : index
    %66 = vector.load %arg2[%c0_73, %c3_74, %c0_75, %c1_76, %c0_77] : memref<1x4x10x10x4xf32, #tpu.memory_space<vmem>>, vector<1x1x8x8x4xf32>
    %67 = vector.shape_cast %66 : vector<1x1x8x8x4xf32> to vector<8x8x4xf32>
    %68 = vector.shape_cast %67 : vector<8x8x4xf32> to vector<64x4xf32>
    %c9 = arith.constant 9 : index
    %c0_78 = arith.constant 0 : index
    %c0_79 = arith.constant 0 : index
    %69 = vector.load %arg3[%c9, %c0_78, %c0_79] : memref<36x4x8xf32, #tpu.memory_space<vmem>>, vector<1x4x8xf32>
    %70 = vector.shape_cast %69 : vector<1x4x8xf32> to vector<4x8xf32>
    %cst_80 = arith.constant dense<0.000000e+00> : vector<64x8xf32>
    %71 = tpu.matmul %68, %70, %cst_80 {dimension_numbers = #tpu.dot_dimension_numbers<[1], [0], [0], [1], [0, 0, 1, 1], [], []>} : vector<64x4xf32>, vector<4x8xf32>, vector<64x8xf32> -> vector<64x8xf32>
    %72 = arith.addf %65, %71 : vector<64x8xf32>
    %c0_81 = arith.constant 0 : index
    %c2_82 = arith.constant 2 : index
    %c0_83 = arith.constant 0 : index
    %c2_84 = arith.constant 2 : index
    %c0_85 = arith.constant 0 : index
    %73 = vector.load %arg2[%c0_81, %c2_82, %c0_83, %c2_84, %c0_85] : memref<1x4x10x10x4xf32, #tpu.memory_space<vmem>>, vector<1x1x8x8x4xf32>
    %74 = vector.shape_cast %73 : vector<1x1x8x8x4xf32> to vector<8x8x4xf32>
    %75 = vector.shape_cast %74 : vector<8x8x4xf32> to vector<64x4xf32>
    %c10 = arith.constant 10 : index
    %c0_86 = arith.constant 0 : index
    %c0_87 = arith.constant 0 : index
    %76 = vector.load %arg3[%c10, %c0_86, %c0_87] : memref<36x4x8xf32, #tpu.memory_space<vmem>>, vector<1x4x8xf32>
    %77 = vector.shape_cast %76 : vector<1x4x8xf32> to vector<4x8xf32>
    %cst_88 = arith.constant dense<0.000000e+00> : vector<64x8xf32>
    %78 = tpu.matmul %75, %77, %cst_88 {dimension_numbers = #tpu.dot_dimension_numbers<[1], [0], [0], [1], [0, 0, 1, 1], [], []>} : vector<64x4xf32>, vector<4x8xf32>, vector<64x8xf32> -> vector<64x8xf32>
    %79 = arith.addf %72, %78 : vector<64x8xf32>
    %c0_89 = arith.constant 0 : index
    %c3_90 = arith.constant 3 : index
    %c0_91 = arith.constant 0 : index
    %c2_92 = arith.constant 2 : index
    %c0_93 = arith.constant 0 : index
    %80 = vector.load %arg2[%c0_89, %c3_90, %c0_91, %c2_92, %c0_93] : memref<1x4x10x10x4xf32, #tpu.memory_space<vmem>>, vector<1x1x8x8x4xf32>
    %81 = vector.shape_cast %80 : vector<1x1x8x8x4xf32> to vector<8x8x4xf32>
    %82 = vector.shape_cast %81 : vector<8x8x4xf32> to vector<64x4xf32>
    %c11 = arith.constant 11 : index
    %c0_94 = arith.constant 0 : index
    %c0_95 = arith.constant 0 : index
    %83 = vector.load %arg3[%c11, %c0_94, %c0_95] : memref<36x4x8xf32, #tpu.memory_space<vmem>>, vector<1x4x8xf32>
    %84 = vector.shape_cast %83 : vector<1x4x8xf32> to vector<4x8xf32>
    %cst_96 = arith.constant dense<0.000000e+00> : vector<64x8xf32>
    %85 = tpu.matmul %82, %84, %cst_96 {dimension_numbers = #tpu.dot_dimension_numbers<[1], [0], [0], [1], [0, 0, 1, 1], [], []>} : vector<64x4xf32>, vector<4x8xf32>, vector<64x8xf32> -> vector<64x8xf32>
    %86 = arith.addf %79, %85 : vector<64x8xf32>
    %c0_97 = arith.constant 0 : index
    %c0_98 = arith.constant 0 : index
    %c1_99 = arith.constant 1 : index
    %c0_100 = arith.constant 0 : index
    %c0_101 = arith.constant 0 : index
    %87 = vector.load %arg2[%c0_97, %c0_98, %c1_99, %c0_100, %c0_101] : memref<1x4x10x10x4xf32, #tpu.memory_space<vmem>>, vector<1x1x8x8x4xf32>
    %88 = vector.shape_cast %87 : vector<1x1x8x8x4xf32> to vector<8x8x4xf32>
    %89 = vector.shape_cast %88 : vector<8x8x4xf32> to vector<64x4xf32>
    %c12 = arith.constant 12 : index
    %c0_102 = arith.constant 0 : index
    %c0_103 = arith.constant 0 : index
    %90 = vector.load %arg3[%c12, %c0_102, %c0_103] : memref<36x4x8xf32, #tpu.memory_space<vmem>>, vector<1x4x8xf32>
    %91 = vector.shape_cast %90 : vector<1x4x8xf32> to vector<4x8xf32>
    %cst_104 = arith.constant dense<0.000000e+00> : vector<64x8xf32>
    %92 = tpu.matmul %89, %91, %cst_104 {dimension_numbers = #tpu.dot_dimension_numbers<[1], [0], [0], [1], [0, 0, 1, 1], [], []>} : vector<64x4xf32>, vector<4x8xf32>, vector<64x8xf32> -> vector<64x8xf32>
    %93 = arith.addf %86, %92 : vector<64x8xf32>
    %c0_105 = arith.constant 0 : index
    %c1_106 = arith.constant 1 : index
    %c1_107 = arith.constant 1 : index
    %c0_108 = arith.constant 0 : index
    %c0_109 = arith.constant 0 : index
    %94 = vector.load %arg2[%c0_105, %c1_106, %c1_107, %c0_108, %c0_109] : memref<1x4x10x10x4xf32, #tpu.memory_space<vmem>>, vector<1x1x8x8x4xf32>
    %95 = vector.shape_cast %94 : vector<1x1x8x8x4xf32> to vector<8x8x4xf32>
    %96 = vector.shape_cast %95 : vector<8x8x4xf32> to vector<64x4xf32>
    %c13 = arith.constant 13 : index
    %c0_110 = arith.constant 0 : index
    %c0_111 = arith.constant 0 : index
    %97 = vector.load %arg3[%c13, %c0_110, %c0_111] : memref<36x4x8xf32, #tpu.memory_space<vmem>>, vector<1x4x8xf32>
    %98 = vector.shape_cast %97 : vector<1x4x8xf32> to vector<4x8xf32>
    %cst_112 = arith.constant dense<0.000000e+00> : vector<64x8xf32>
    %99 = tpu.matmul %96, %98, %cst_112 {dimension_numbers = #tpu.dot_dimension_numbers<[1], [0], [0], [1], [0, 0, 1, 1], [], []>} : vector<64x4xf32>, vector<4x8xf32>, vector<64x8xf32> -> vector<64x8xf32>
    %100 = arith.addf %93, %99 : vector<64x8xf32>
    %c0_113 = arith.constant 0 : index
    %c0_114 = arith.constant 0 : index
    %c1_115 = arith.constant 1 : index
    %c1_116 = arith.constant 1 : index
    %c0_117 = arith.constant 0 : index
    %101 = vector.load %arg2[%c0_113, %c0_114, %c1_115, %c1_116, %c0_117] : memref<1x4x10x10x4xf32, #tpu.memory_space<vmem>>, vector<1x1x8x8x4xf32>
    %102 = vector.shape_cast %101 : vector<1x1x8x8x4xf32> to vector<8x8x4xf32>
    %103 = vector.shape_cast %102 : vector<8x8x4xf32> to vector<64x4xf32>
    %c14 = arith.constant 14 : index
    %c0_118 = arith.constant 0 : index
    %c0_119 = arith.constant 0 : index
    %104 = vector.load %arg3[%c14, %c0_118, %c0_119] : memref<36x4x8xf32, #tpu.memory_space<vmem>>, vector<1x4x8xf32>
    %105 = vector.shape_cast %104 : vector<1x4x8xf32> to vector<4x8xf32>
    %cst_120 = arith.constant dense<0.000000e+00> : vector<64x8xf32>
    %106 = tpu.matmul %103, %105, %cst_120 {dimension_numbers = #tpu.dot_dimension_numbers<[1], [0], [0], [1], [0, 0, 1, 1], [], []>} : vector<64x4xf32>, vector<4x8xf32>, vector<64x8xf32> -> vector<64x8xf32>
    %107 = arith.addf %100, %106 : vector<64x8xf32>
    %c0_121 = arith.constant 0 : index
    %c1_122 = arith.constant 1 : index
    %c1_123 = arith.constant 1 : index
    %c1_124 = arith.constant 1 : index
    %c0_125 = arith.constant 0 : index
    %108 = vector.load %arg2[%c0_121, %c1_122, %c1_123, %c1_124, %c0_125] : memref<1x4x10x10x4xf32, #tpu.memory_space<vmem>>, vector<1x1x8x8x4xf32>
    %109 = vector.shape_cast %108 : vector<1x1x8x8x4xf32> to vector<8x8x4xf32>
    %110 = vector.shape_cast %109 : vector<8x8x4xf32> to vector<64x4xf32>
    %c15 = arith.constant 15 : index
    %c0_126 = arith.constant 0 : index
    %c0_127 = arith.constant 0 : index
    %111 = vector.load %arg3[%c15, %c0_126, %c0_127] : memref<36x4x8xf32, #tpu.memory_space<vmem>>, vector<1x4x8xf32>
    %112 = vector.shape_cast %111 : vector<1x4x8xf32> to vector<4x8xf32>
    %cst_128 = arith.constant dense<0.000000e+00> : vector<64x8xf32>
    %113 = tpu.matmul %110, %112, %cst_128 {dimension_numbers = #tpu.dot_dimension_numbers<[1], [0], [0], [1], [0, 0, 1, 1], [], []>} : vector<64x4xf32>, vector<4x8xf32>, vector<64x8xf32> -> vector<64x8xf32>
    %114 = arith.addf %107, %113 : vector<64x8xf32>
    %c0_129 = arith.constant 0 : index
    %c0_130 = arith.constant 0 : index
    %c1_131 = arith.constant 1 : index
    %c2_132 = arith.constant 2 : index
    %c0_133 = arith.constant 0 : index
    %115 = vector.load %arg2[%c0_129, %c0_130, %c1_131, %c2_132, %c0_133] : memref<1x4x10x10x4xf32, #tpu.memory_space<vmem>>, vector<1x1x8x8x4xf32>
    %116 = vector.shape_cast %115 : vector<1x1x8x8x4xf32> to vector<8x8x4xf32>
    %117 = vector.shape_cast %116 : vector<8x8x4xf32> to vector<64x4xf32>
    %c16 = arith.constant 16 : index
    %c0_134 = arith.constant 0 : index
    %c0_135 = arith.constant 0 : index
    %118 = vector.load %arg3[%c16, %c0_134, %c0_135] : memref<36x4x8xf32, #tpu.memory_space<vmem>>, vector<1x4x8xf32>
    %119 = vector.shape_cast %118 : vector<1x4x8xf32> to vector<4x8xf32>
    %cst_136 = arith.constant dense<0.000000e+00> : vector<64x8xf32>
    %120 = tpu.matmul %117, %119, %cst_136 {dimension_numbers = #tpu.dot_dimension_numbers<[1], [0], [0], [1], [0, 0, 1, 1], [], []>} : vector<64x4xf32>, vector<4x8xf32>, vector<64x8xf32> -> vector<64x8xf32>
    %121 = arith.addf %114, %120 : vector<64x8xf32>
    %c0_137 = arith.constant 0 : index
    %c1_138 = arith.constant 1 : index
    %c1_139 = arith.constant 1 : index
    %c2_140 = arith.constant 2 : index
    %c0_141 = arith.constant 0 : index
    %122 = vector.load %arg2[%c0_137, %c1_138, %c1_139, %c2_140, %c0_141] : memref<1x4x10x10x4xf32, #tpu.memory_space<vmem>>, vector<1x1x8x8x4xf32>
    %123 = vector.shape_cast %122 : vector<1x1x8x8x4xf32> to vector<8x8x4xf32>
    %124 = vector.shape_cast %123 : vector<8x8x4xf32> to vector<64x4xf32>
    %c17 = arith.constant 17 : index
    %c0_142 = arith.constant 0 : index
    %c0_143 = arith.constant 0 : index
    %125 = vector.load %arg3[%c17, %c0_142, %c0_143] : memref<36x4x8xf32, #tpu.memory_space<vmem>>, vector<1x4x8xf32>
    %126 = vector.shape_cast %125 : vector<1x4x8xf32> to vector<4x8xf32>
    %cst_144 = arith.constant dense<0.000000e+00> : vector<64x8xf32>
    %127 = tpu.matmul %124, %126, %cst_144 {dimension_numbers = #tpu.dot_dimension_numbers<[1], [0], [0], [1], [0, 0, 1, 1], [], []>} : vector<64x4xf32>, vector<4x8xf32>, vector<64x8xf32> -> vector<64x8xf32>
    %128 = arith.addf %121, %127 : vector<64x8xf32>
    %c0_145 = arith.constant 0 : index
    %c2_146 = arith.constant 2 : index
    %c1_147 = arith.constant 1 : index
    %c0_148 = arith.constant 0 : index
    %c0_149 = arith.constant 0 : index
    %129 = vector.load %arg2[%c0_145, %c2_146, %c1_147, %c0_148, %c0_149] : memref<1x4x10x10x4xf32, #tpu.memory_space<vmem>>, vector<1x1x8x8x4xf32>
    %130 = vector.shape_cast %129 : vector<1x1x8x8x4xf32> to vector<8x8x4xf32>
    %131 = vector.shape_cast %130 : vector<8x8x4xf32> to vector<64x4xf32>
    %c18 = arith.constant 18 : index
    %c0_150 = arith.constant 0 : index
    %c0_151 = arith.constant 0 : index
    %132 = vector.load %arg3[%c18, %c0_150, %c0_151] : memref<36x4x8xf32, #tpu.memory_space<vmem>>, vector<1x4x8xf32>
    %133 = vector.shape_cast %132 : vector<1x4x8xf32> to vector<4x8xf32>
    %cst_152 = arith.constant dense<0.000000e+00> : vector<64x8xf32>
    %134 = tpu.matmul %131, %133, %cst_152 {dimension_numbers = #tpu.dot_dimension_numbers<[1], [0], [0], [1], [0, 0, 1, 1], [], []>} : vector<64x4xf32>, vector<4x8xf32>, vector<64x8xf32> -> vector<64x8xf32>
    %135 = arith.addf %128, %134 : vector<64x8xf32>
    %c0_153 = arith.constant 0 : index
    %c3_154 = arith.constant 3 : index
    %c1_155 = arith.constant 1 : index
    %c0_156 = arith.constant 0 : index
    %c0_157 = arith.constant 0 : index
    %136 = vector.load %arg2[%c0_153, %c3_154, %c1_155, %c0_156, %c0_157] : memref<1x4x10x10x4xf32, #tpu.memory_space<vmem>>, vector<1x1x8x8x4xf32>
    %137 = vector.shape_cast %136 : vector<1x1x8x8x4xf32> to vector<8x8x4xf32>
    %138 = vector.shape_cast %137 : vector<8x8x4xf32> to vector<64x4xf32>
    %c19 = arith.constant 19 : index
    %c0_158 = arith.constant 0 : index
    %c0_159 = arith.constant 0 : index
    %139 = vector.load %arg3[%c19, %c0_158, %c0_159] : memref<36x4x8xf32, #tpu.memory_space<vmem>>, vector<1x4x8xf32>
    %140 = vector.shape_cast %139 : vector<1x4x8xf32> to vector<4x8xf32>
    %cst_160 = arith.constant dense<0.000000e+00> : vector<64x8xf32>
    %141 = tpu.matmul %138, %140, %cst_160 {dimension_numbers = #tpu.dot_dimension_numbers<[1], [0], [0], [1], [0, 0, 1, 1], [], []>} : vector<64x4xf32>, vector<4x8xf32>, vector<64x8xf32> -> vector<64x8xf32>
    %142 = arith.addf %135, %141 : vector<64x8xf32>
    %c0_161 = arith.constant 0 : index
    %c2_162 = arith.constant 2 : index
    %c1_163 = arith.constant 1 : index
    %c1_164 = arith.constant 1 : index
    %c0_165 = arith.constant 0 : index
    %143 = vector.load %arg2[%c0_161, %c2_162, %c1_163, %c1_164, %c0_165] : memref<1x4x10x10x4xf32, #tpu.memory_space<vmem>>, vector<1x1x8x8x4xf32>
    %144 = vector.shape_cast %143 : vector<1x1x8x8x4xf32> to vector<8x8x4xf32>
    %145 = vector.shape_cast %144 : vector<8x8x4xf32> to vector<64x4xf32>
    %c20 = arith.constant 20 : index
    %c0_166 = arith.constant 0 : index
    %c0_167 = arith.constant 0 : index
    %146 = vector.load %arg3[%c20, %c0_166, %c0_167] : memref<36x4x8xf32, #tpu.memory_space<vmem>>, vector<1x4x8xf32>
    %147 = vector.shape_cast %146 : vector<1x4x8xf32> to vector<4x8xf32>
    %cst_168 = arith.constant dense<0.000000e+00> : vector<64x8xf32>
    %148 = tpu.matmul %145, %147, %cst_168 {dimension_numbers = #tpu.dot_dimension_numbers<[1], [0], [0], [1], [0, 0, 1, 1], [], []>} : vector<64x4xf32>, vector<4x8xf32>, vector<64x8xf32> -> vector<64x8xf32>
    %149 = arith.addf %142, %148 : vector<64x8xf32>
    %c0_169 = arith.constant 0 : index
    %c3_170 = arith.constant 3 : index
    %c1_171 = arith.constant 1 : index
    %c1_172 = arith.constant 1 : index
    %c0_173 = arith.constant 0 : index
    %150 = vector.load %arg2[%c0_169, %c3_170, %c1_171, %c1_172, %c0_173] : memref<1x4x10x10x4xf32, #tpu.memory_space<vmem>>, vector<1x1x8x8x4xf32>
    %151 = vector.shape_cast %150 : vector<1x1x8x8x4xf32> to vector<8x8x4xf32>
    %152 = vector.shape_cast %151 : vector<8x8x4xf32> to vector<64x4xf32>
    %c21 = arith.constant 21 : index
    %c0_174 = arith.constant 0 : index
    %c0_175 = arith.constant 0 : index
    %153 = vector.load %arg3[%c21, %c0_174, %c0_175] : memref<36x4x8xf32, #tpu.memory_space<vmem>>, vector<1x4x8xf32>
    %154 = vector.shape_cast %153 : vector<1x4x8xf32> to vector<4x8xf32>
    %cst_176 = arith.constant dense<0.000000e+00> : vector<64x8xf32>
    %155 = tpu.matmul %152, %154, %cst_176 {dimension_numbers = #tpu.dot_dimension_numbers<[1], [0], [0], [1], [0, 0, 1, 1], [], []>} : vector<64x4xf32>, vector<4x8xf32>, vector<64x8xf32> -> vector<64x8xf32>
    %156 = arith.addf %149, %155 : vector<64x8xf32>
    %c0_177 = arith.constant 0 : index
    %c2_178 = arith.constant 2 : index
    %c1_179 = arith.constant 1 : index
    %c2_180 = arith.constant 2 : index
    %c0_181 = arith.constant 0 : index
    %157 = vector.load %arg2[%c0_177, %c2_178, %c1_179, %c2_180, %c0_181] : memref<1x4x10x10x4xf32, #tpu.memory_space<vmem>>, vector<1x1x8x8x4xf32>
    %158 = vector.shape_cast %157 : vector<1x1x8x8x4xf32> to vector<8x8x4xf32>
    %159 = vector.shape_cast %158 : vector<8x8x4xf32> to vector<64x4xf32>
    %c22 = arith.constant 22 : index
    %c0_182 = arith.constant 0 : index
    %c0_183 = arith.constant 0 : index
    %160 = vector.load %arg3[%c22, %c0_182, %c0_183] : memref<36x4x8xf32, #tpu.memory_space<vmem>>, vector<1x4x8xf32>
    %161 = vector.shape_cast %160 : vector<1x4x8xf32> to vector<4x8xf32>
    %cst_184 = arith.constant dense<0.000000e+00> : vector<64x8xf32>
    %162 = tpu.matmul %159, %161, %cst_184 {dimension_numbers = #tpu.dot_dimension_numbers<[1], [0], [0], [1], [0, 0, 1, 1], [], []>} : vector<64x4xf32>, vector<4x8xf32>, vector<64x8xf32> -> vector<64x8xf32>
    %163 = arith.addf %156, %162 : vector<64x8xf32>
    %c0_185 = arith.constant 0 : index
    %c3_186 = arith.constant 3 : index
    %c1_187 = arith.constant 1 : index
    %c2_188 = arith.constant 2 : index
    %c0_189 = arith.constant 0 : index
    %164 = vector.load %arg2[%c0_185, %c3_186, %c1_187, %c2_188, %c0_189] : memref<1x4x10x10x4xf32, #tpu.memory_space<vmem>>, vector<1x1x8x8x4xf32>
    %165 = vector.shape_cast %164 : vector<1x1x8x8x4xf32> to vector<8x8x4xf32>
    %166 = vector.shape_cast %165 : vector<8x8x4xf32> to vector<64x4xf32>
    %c23 = arith.constant 23 : index
    %c0_190 = arith.constant 0 : index
    %c0_191 = arith.constant 0 : index
    %167 = vector.load %arg3[%c23, %c0_190, %c0_191] : memref<36x4x8xf32, #tpu.memory_space<vmem>>, vector<1x4x8xf32>
    %168 = vector.shape_cast %167 : vector<1x4x8xf32> to vector<4x8xf32>
    %cst_192 = arith.constant dense<0.000000e+00> : vector<64x8xf32>
    %169 = tpu.matmul %166, %168, %cst_192 {dimension_numbers = #tpu.dot_dimension_numbers<[1], [0], [0], [1], [0, 0, 1, 1], [], []>} : vector<64x4xf32>, vector<4x8xf32>, vector<64x8xf32> -> vector<64x8xf32>
    %170 = arith.addf %163, %169 : vector<64x8xf32>
    %c0_193 = arith.constant 0 : index
    %c0_194 = arith.constant 0 : index
    %c2_195 = arith.constant 2 : index
    %c0_196 = arith.constant 0 : index
    %c0_197 = arith.constant 0 : index
    %171 = vector.load %arg2[%c0_193, %c0_194, %c2_195, %c0_196, %c0_197] : memref<1x4x10x10x4xf32, #tpu.memory_space<vmem>>, vector<1x1x8x8x4xf32>
    %172 = vector.shape_cast %171 : vector<1x1x8x8x4xf32> to vector<8x8x4xf32>
    %173 = vector.shape_cast %172 : vector<8x8x4xf32> to vector<64x4xf32>
    %c24 = arith.constant 24 : index
    %c0_198 = arith.constant 0 : index
    %c0_199 = arith.constant 0 : index
    %174 = vector.load %arg3[%c24, %c0_198, %c0_199] : memref<36x4x8xf32, #tpu.memory_space<vmem>>, vector<1x4x8xf32>
    %175 = vector.shape_cast %174 : vector<1x4x8xf32> to vector<4x8xf32>
    %cst_200 = arith.constant dense<0.000000e+00> : vector<64x8xf32>
    %176 = tpu.matmul %173, %175, %cst_200 {dimension_numbers = #tpu.dot_dimension_numbers<[1], [0], [0], [1], [0, 0, 1, 1], [], []>} : vector<64x4xf32>, vector<4x8xf32>, vector<64x8xf32> -> vector<64x8xf32>
    %177 = arith.addf %170, %176 : vector<64x8xf32>
    %c0_201 = arith.constant 0 : index
    %c1_202 = arith.constant 1 : index
    %c2_203 = arith.constant 2 : index
    %c0_204 = arith.constant 0 : index
    %c0_205 = arith.constant 0 : index
    %178 = vector.load %arg2[%c0_201, %c1_202, %c2_203, %c0_204, %c0_205] : memref<1x4x10x10x4xf32, #tpu.memory_space<vmem>>, vector<1x1x8x8x4xf32>
    %179 = vector.shape_cast %178 : vector<1x1x8x8x4xf32> to vector<8x8x4xf32>
    %180 = vector.shape_cast %179 : vector<8x8x4xf32> to vector<64x4xf32>
    %c25 = arith.constant 25 : index
    %c0_206 = arith.constant 0 : index
    %c0_207 = arith.constant 0 : index
    %181 = vector.load %arg3[%c25, %c0_206, %c0_207] : memref<36x4x8xf32, #tpu.memory_space<vmem>>, vector<1x4x8xf32>
    %182 = vector.shape_cast %181 : vector<1x4x8xf32> to vector<4x8xf32>
    %cst_208 = arith.constant dense<0.000000e+00> : vector<64x8xf32>
    %183 = tpu.matmul %180, %182, %cst_208 {dimension_numbers = #tpu.dot_dimension_numbers<[1], [0], [0], [1], [0, 0, 1, 1], [], []>} : vector<64x4xf32>, vector<4x8xf32>, vector<64x8xf32> -> vector<64x8xf32>
    %184 = arith.addf %177, %183 : vector<64x8xf32>
    %c0_209 = arith.constant 0 : index
    %c0_210 = arith.constant 0 : index
    %c2_211 = arith.constant 2 : index
    %c1_212 = arith.constant 1 : index
    %c0_213 = arith.constant 0 : index
    %185 = vector.load %arg2[%c0_209, %c0_210, %c2_211, %c1_212, %c0_213] : memref<1x4x10x10x4xf32, #tpu.memory_space<vmem>>, vector<1x1x8x8x4xf32>
    %186 = vector.shape_cast %185 : vector<1x1x8x8x4xf32> to vector<8x8x4xf32>
    %187 = vector.shape_cast %186 : vector<8x8x4xf32> to vector<64x4xf32>
    %c26 = arith.constant 26 : index
    %c0_214 = arith.constant 0 : index
    %c0_215 = arith.constant 0 : index
    %188 = vector.load %arg3[%c26, %c0_214, %c0_215] : memref<36x4x8xf32, #tpu.memory_space<vmem>>, vector<1x4x8xf32>
    %189 = vector.shape_cast %188 : vector<1x4x8xf32> to vector<4x8xf32>
    %cst_216 = arith.constant dense<0.000000e+00> : vector<64x8xf32>
    %190 = tpu.matmul %187, %189, %cst_216 {dimension_numbers = #tpu.dot_dimension_numbers<[1], [0], [0], [1], [0, 0, 1, 1], [], []>} : vector<64x4xf32>, vector<4x8xf32>, vector<64x8xf32> -> vector<64x8xf32>
    %191 = arith.addf %184, %190 : vector<64x8xf32>
    %c0_217 = arith.constant 0 : index
    %c1_218 = arith.constant 1 : index
    %c2_219 = arith.constant 2 : index
    %c1_220 = arith.constant 1 : index
    %c0_221 = arith.constant 0 : index
    %192 = vector.load %arg2[%c0_217, %c1_218, %c2_219, %c1_220, %c0_221] : memref<1x4x10x10x4xf32, #tpu.memory_space<vmem>>, vector<1x1x8x8x4xf32>
    %193 = vector.shape_cast %192 : vector<1x1x8x8x4xf32> to vector<8x8x4xf32>
    %194 = vector.shape_cast %193 : vector<8x8x4xf32> to vector<64x4xf32>
    %c27 = arith.constant 27 : index
    %c0_222 = arith.constant 0 : index
    %c0_223 = arith.constant 0 : index
    %195 = vector.load %arg3[%c27, %c0_222, %c0_223] : memref<36x4x8xf32, #tpu.memory_space<vmem>>, vector<1x4x8xf32>
    %196 = vector.shape_cast %195 : vector<1x4x8xf32> to vector<4x8xf32>
    %cst_224 = arith.constant dense<0.000000e+00> : vector<64x8xf32>
    %197 = tpu.matmul %194, %196, %cst_224 {dimension_numbers = #tpu.dot_dimension_numbers<[1], [0], [0], [1], [0, 0, 1, 1], [], []>} : vector<64x4xf32>, vector<4x8xf32>, vector<64x8xf32> -> vector<64x8xf32>
    %198 = arith.addf %191, %197 : vector<64x8xf32>
    %c0_225 = arith.constant 0 : index
    %c0_226 = arith.constant 0 : index
    %c2_227 = arith.constant 2 : index
    %c2_228 = arith.constant 2 : index
    %c0_229 = arith.constant 0 : index
    %199 = vector.load %arg2[%c0_225, %c0_226, %c2_227, %c2_228, %c0_229] : memref<1x4x10x10x4xf32, #tpu.memory_space<vmem>>, vector<1x1x8x8x4xf32>
    %200 = vector.shape_cast %199 : vector<1x1x8x8x4xf32> to vector<8x8x4xf32>
    %201 = vector.shape_cast %200 : vector<8x8x4xf32> to vector<64x4xf32>
    %c28 = arith.constant 28 : index
    %c0_230 = arith.constant 0 : index
    %c0_231 = arith.constant 0 : index
    %202 = vector.load %arg3[%c28, %c0_230, %c0_231] : memref<36x4x8xf32, #tpu.memory_space<vmem>>, vector<1x4x8xf32>
    %203 = vector.shape_cast %202 : vector<1x4x8xf32> to vector<4x8xf32>
    %cst_232 = arith.constant dense<0.000000e+00> : vector<64x8xf32>
    %204 = tpu.matmul %201, %203, %cst_232 {dimension_numbers = #tpu.dot_dimension_numbers<[1], [0], [0], [1], [0, 0, 1, 1], [], []>} : vector<64x4xf32>, vector<4x8xf32>, vector<64x8xf32> -> vector<64x8xf32>
    %205 = arith.addf %198, %204 : vector<64x8xf32>
    %c0_233 = arith.constant 0 : index
    %c1_234 = arith.constant 1 : index
    %c2_235 = arith.constant 2 : index
    %c2_236 = arith.constant 2 : index
    %c0_237 = arith.constant 0 : index
    %206 = vector.load %arg2[%c0_233, %c1_234, %c2_235, %c2_236, %c0_237] : memref<1x4x10x10x4xf32, #tpu.memory_space<vmem>>, vector<1x1x8x8x4xf32>
    %207 = vector.shape_cast %206 : vector<1x1x8x8x4xf32> to vector<8x8x4xf32>
    %208 = vector.shape_cast %207 : vector<8x8x4xf32> to vector<64x4xf32>
    %c29 = arith.constant 29 : index
    %c0_238 = arith.constant 0 : index
    %c0_239 = arith.constant 0 : index
    %209 = vector.load %arg3[%c29, %c0_238, %c0_239] : memref<36x4x8xf32, #tpu.memory_space<vmem>>, vector<1x4x8xf32>
    %210 = vector.shape_cast %209 : vector<1x4x8xf32> to vector<4x8xf32>
    %cst_240 = arith.constant dense<0.000000e+00> : vector<64x8xf32>
    %211 = tpu.matmul %208, %210, %cst_240 {dimension_numbers = #tpu.dot_dimension_numbers<[1], [0], [0], [1], [0, 0, 1, 1], [], []>} : vector<64x4xf32>, vector<4x8xf32>, vector<64x8xf32> -> vector<64x8xf32>
    %212 = arith.addf %205, %211 : vector<64x8xf32>
    %c0_241 = arith.constant 0 : index
    %c2_242 = arith.constant 2 : index
    %c2_243 = arith.constant 2 : index
    %c0_244 = arith.constant 0 : index
    %c0_245 = arith.constant 0 : index
    %213 = vector.load %arg2[%c0_241, %c2_242, %c2_243, %c0_244, %c0_245] : memref<1x4x10x10x4xf32, #tpu.memory_space<vmem>>, vector<1x1x8x8x4xf32>
    %214 = vector.shape_cast %213 : vector<1x1x8x8x4xf32> to vector<8x8x4xf32>
    %215 = vector.shape_cast %214 : vector<8x8x4xf32> to vector<64x4xf32>
    %c30 = arith.constant 30 : index
    %c0_246 = arith.constant 0 : index
    %c0_247 = arith.constant 0 : index
    %216 = vector.load %arg3[%c30, %c0_246, %c0_247] : memref<36x4x8xf32, #tpu.memory_space<vmem>>, vector<1x4x8xf32>
    %217 = vector.shape_cast %216 : vector<1x4x8xf32> to vector<4x8xf32>
    %cst_248 = arith.constant dense<0.000000e+00> : vector<64x8xf32>
    %218 = tpu.matmul %215, %217, %cst_248 {dimension_numbers = #tpu.dot_dimension_numbers<[1], [0], [0], [1], [0, 0, 1, 1], [], []>} : vector<64x4xf32>, vector<4x8xf32>, vector<64x8xf32> -> vector<64x8xf32>
    %219 = arith.addf %212, %218 : vector<64x8xf32>
    %c0_249 = arith.constant 0 : index
    %c3_250 = arith.constant 3 : index
    %c2_251 = arith.constant 2 : index
    %c0_252 = arith.constant 0 : index
    %c0_253 = arith.constant 0 : index
    %220 = vector.load %arg2[%c0_249, %c3_250, %c2_251, %c0_252, %c0_253] : memref<1x4x10x10x4xf32, #tpu.memory_space<vmem>>, vector<1x1x8x8x4xf32>
    %221 = vector.shape_cast %220 : vector<1x1x8x8x4xf32> to vector<8x8x4xf32>
    %222 = vector.shape_cast %221 : vector<8x8x4xf32> to vector<64x4xf32>
    %c31 = arith.constant 31 : index
    %c0_254 = arith.constant 0 : index
    %c0_255 = arith.constant 0 : index
    %223 = vector.load %arg3[%c31, %c0_254, %c0_255] : memref<36x4x8xf32, #tpu.memory_space<vmem>>, vector<1x4x8xf32>
    %224 = vector.shape_cast %223 : vector<1x4x8xf32> to vector<4x8xf32>
    %cst_256 = arith.constant dense<0.000000e+00> : vector<64x8xf32>
    %225 = tpu.matmul %222, %224, %cst_256 {dimension_numbers = #tpu.dot_dimension_numbers<[1], [0], [0], [1], [0, 0, 1, 1], [], []>} : vector<64x4xf32>, vector<4x8xf32>, vector<64x8xf32> -> vector<64x8xf32>
    %226 = arith.addf %219, %225 : vector<64x8xf32>
    %c0_257 = arith.constant 0 : index
    %c2_258 = arith.constant 2 : index
    %c2_259 = arith.constant 2 : index
    %c1_260 = arith.constant 1 : index
    %c0_261 = arith.constant 0 : index
    %227 = vector.load %arg2[%c0_257, %c2_258, %c2_259, %c1_260, %c0_261] : memref<1x4x10x10x4xf32, #tpu.memory_space<vmem>>, vector<1x1x8x8x4xf32>
    %228 = vector.shape_cast %227 : vector<1x1x8x8x4xf32> to vector<8x8x4xf32>
    %229 = vector.shape_cast %228 : vector<8x8x4xf32> to vector<64x4xf32>
    %c32 = arith.constant 32 : index
    %c0_262 = arith.constant 0 : index
    %c0_263 = arith.constant 0 : index
    %230 = vector.load %arg3[%c32, %c0_262, %c0_263] : memref<36x4x8xf32, #tpu.memory_space<vmem>>, vector<1x4x8xf32>
    %231 = vector.shape_cast %230 : vector<1x4x8xf32> to vector<4x8xf32>
    %cst_264 = arith.constant dense<0.000000e+00> : vector<64x8xf32>
    %232 = tpu.matmul %229, %231, %cst_264 {dimension_numbers = #tpu.dot_dimension_numbers<[1], [0], [0], [1], [0, 0, 1, 1], [], []>} : vector<64x4xf32>, vector<4x8xf32>, vector<64x8xf32> -> vector<64x8xf32>
    %233 = arith.addf %226, %232 : vector<64x8xf32>
    %c0_265 = arith.constant 0 : index
    %c3_266 = arith.constant 3 : index
    %c2_267 = arith.constant 2 : index
    %c1_268 = arith.constant 1 : index
    %c0_269 = arith.constant 0 : index
    %234 = vector.load %arg2[%c0_265, %c3_266, %c2_267, %c1_268, %c0_269] : memref<1x4x10x10x4xf32, #tpu.memory_space<vmem>>, vector<1x1x8x8x4xf32>
    %235 = vector.shape_cast %234 : vector<1x1x8x8x4xf32> to vector<8x8x4xf32>
    %236 = vector.shape_cast %235 : vector<8x8x4xf32> to vector<64x4xf32>
    %c33 = arith.constant 33 : index
    %c0_270 = arith.constant 0 : index
    %c0_271 = arith.constant 0 : index
    %237 = vector.load %arg3[%c33, %c0_270, %c0_271] : memref<36x4x8xf32, #tpu.memory_space<vmem>>, vector<1x4x8xf32>
    %238 = vector.shape_cast %237 : vector<1x4x8xf32> to vector<4x8xf32>
    %cst_272 = arith.constant dense<0.000000e+00> : vector<64x8xf32>
    %239 = tpu.matmul %236, %238, %cst_272 {dimension_numbers = #tpu.dot_dimension_numbers<[1], [0], [0], [1], [0, 0, 1, 1], [], []>} : vector<64x4xf32>, vector<4x8xf32>, vector<64x8xf32> -> vector<64x8xf32>
    %240 = arith.addf %233, %239 : vector<64x8xf32>
    %c0_273 = arith.constant 0 : index
    %c2_274 = arith.constant 2 : index
    %c2_275 = arith.constant 2 : index
    %c2_276 = arith.constant 2 : index
    %c0_277 = arith.constant 0 : index
    %241 = vector.load %arg2[%c0_273, %c2_274, %c2_275, %c2_276, %c0_277] : memref<1x4x10x10x4xf32, #tpu.memory_space<vmem>>, vector<1x1x8x8x4xf32>
    %242 = vector.shape_cast %241 : vector<1x1x8x8x4xf32> to vector<8x8x4xf32>
    %243 = vector.shape_cast %242 : vector<8x8x4xf32> to vector<64x4xf32>
    %c34 = arith.constant 34 : index
    %c0_278 = arith.constant 0 : index
    %c0_279 = arith.constant 0 : index
    %244 = vector.load %arg3[%c34, %c0_278, %c0_279] : memref<36x4x8xf32, #tpu.memory_space<vmem>>, vector<1x4x8xf32>
    %245 = vector.shape_cast %244 : vector<1x4x8xf32> to vector<4x8xf32>
    %cst_280 = arith.constant dense<0.000000e+00> : vector<64x8xf32>
    %246 = tpu.matmul %243, %245, %cst_280 {dimension_numbers = #tpu.dot_dimension_numbers<[1], [0], [0], [1], [0, 0, 1, 1], [], []>} : vector<64x4xf32>, vector<4x8xf32>, vector<64x8xf32> -> vector<64x8xf32>
    %247 = arith.addf %240, %246 : vector<64x8xf32>
    %c0_281 = arith.constant 0 : index
    %c3_282 = arith.constant 3 : index
    %c2_283 = arith.constant 2 : index
    %c2_284 = arith.constant 2 : index
    %c0_285 = arith.constant 0 : index
    %248 = vector.load %arg2[%c0_281, %c3_282, %c2_283, %c2_284, %c0_285] : memref<1x4x10x10x4xf32, #tpu.memory_space<vmem>>, vector<1x1x8x8x4xf32>
    %249 = vector.shape_cast %248 : vector<1x1x8x8x4xf32> to vector<8x8x4xf32>
    %250 = vector.shape_cast %249 : vector<8x8x4xf32> to vector<64x4xf32>
    %c35 = arith.constant 35 : index
    %c0_286 = arith.constant 0 : index
    %c0_287 = arith.constant 0 : index
    %251 = vector.load %arg3[%c35, %c0_286, %c0_287] : memref<36x4x8xf32, #tpu.memory_space<vmem>>, vector<1x4x8xf32>
    %252 = vector.shape_cast %251 : vector<1x4x8xf32> to vector<4x8xf32>
    %cst_288 = arith.constant dense<0.000000e+00> : vector<64x8xf32>
    %253 = tpu.matmul %250, %252, %cst_288 {dimension_numbers = #tpu.dot_dimension_numbers<[1], [0], [0], [1], [0, 0, 1, 1], [], []>} : vector<64x4xf32>, vector<4x8xf32>, vector<64x8xf32> -> vector<64x8xf32>
    %254 = arith.addf %247, %253 : vector<64x8xf32>
    %255 = vector.shape_cast %254 : vector<64x8xf32> to vector<8x8x8xf32>
    %c0_289 = arith.constant 0 : index
    %c0_290 = arith.constant 0 : index
    %c0_291 = arith.constant 0 : index
    %c0_292 = arith.constant 0 : index
    %256 = vector.load %arg5[%c0_289, %c0_290, %c0_291, %c0_292] : memref<1x8x8x8xf32, #tpu.memory_space<vmem>>, vector<1x8x8x8xf32>
    %257 = vector.shape_cast %256 : vector<1x8x8x8xf32> to vector<8x8x8xf32>
    %258 = vector.shape_cast %255 : vector<8x8x8xf32> to vector<1x8x8x8xf32>
    tpu.vector_store %arg5[%c0_289, %c0_290, %c0_291, %c0_292], %258 {strides = array<i32>} : memref<1x8x8x8xf32, #tpu.memory_space<vmem>>, vector<1x8x8x8xf32>,
    return
  }
  func.func @transform_0(%arg0: i32, %arg1: i32) -> (i32, i32, i32, i32, i32) {
    %c0_i32 = arith.constant 0 : i32
    %c0_i32_0 = arith.constant 0 : i32
    %c0_i32_1 = arith.constant 0 : i32
    %c0_i32_2 = arith.constant 0 : i32
    %c0_i32_3 = arith.constant 0 : i32
    return %arg0, %c0_i32, %c0_i32_0, %c0_i32_1, %c0_i32_2 : i32, i32, i32, i32, i32
  }
  func.func @transform_1(%arg0: i32, %arg1: i32) -> (i32, i32, i32) {
    %c0_i32 = arith.constant 0 : i32
    %c0_i32_0 = arith.constant 0 : i32
    %c0_i32_1 = arith.constant 0 : i32
    return %c0_i32, %c0_i32_0, %arg1 : i32, i32, i32
  }
  func.func @transform_2(%arg0: i32, %arg1: i32) -> (i32, i32) {
    %c0_i32 = arith.constant 0 : i32
    %c0_i32_0 = arith.constant 0 : i32
    return %c0_i32, %arg1 : i32, i32
  }
  func.func @transform_3(%arg0: i32, %arg1: i32) -> (i32, i32, i32, i32) {
    %c0_i32 = arith.constant 0 : i32
    %c0_i32_0 = arith.constant 0 : i32
    %c0_i32_1 = arith.constant 0 : i32
    return %arg0, %c0_i32, %c0_i32_0, %arg1 : i32, i32, i32, i32
  }
}

</mosaic_0001>

<bundles_post_ra>
// kernel: conv2d_downsample.1
= control target key start
LH: loop header
LB: loop body
LE: loop exit
PB: predicated region body
PF: predicated region fallthrough
CT: control target
= control target key end

     0   :  { %s7577_s12 = smov 0   ;;  %s7579_s13 = smov 0   ;;  %s8681_s0 = inlined_call_operand.vmem [shape: f32[2,4,10,10,4], index: 0, kind: input, shape index: {}]   ;;  %s8682_s1 = inlined_call_operand.vmem [shape: f32[36,4,8], index: 1, kind: input, shape index: {}]   ;;  %s8683_s2 = inlined_call_operand.vmem [shape: f32[1,8], index: 2, kind: input, shape index: {}]   ;;  %s8684_s3 = inlined_call_operand.vmem [shape: f32[2,8,8,8], index: 3, kind: output, shape index: {}]  }
   0x1   :  { %s7581_s14 = smov 0  }
   0x2 LB: > { %s25_s15 = sadd.s32 1, %s7551_s13  ;;  %p5761_p0 = scmp.ge.s32.totalorder %s7555_s14, 1  ;;  %s7555_s14 = sphi %s7581_s14, %s13_s14   ;;  %s7551_s13 = sphi %s7579_s13, %s8834_s13   ;;  %s7547_s12 = sphi %s7577_s12, %s8833_s12  }
   0x3   : > { %p27_p1 = scmp.ge.s32.totalorder %s25_s15, 2  ;;  %p168_p2 = scmp.lt.s32.totalorder %s7555_s14, 3 }
   0x5   : > { %s8836_s15 = smov (%p27_p1, %s25_s15), 0  ;;  %p169_p3 = pnand %p5761_p0, %p168_p2 }
   0x7   : > { %172 = sbr.rel (%p169_p3) target bundleno = 524 (0x20c), region = 32 }
   0xe   : > { %v237_v0 = vld [vmem:[%s8682_s1] sm:$0xf]  ;;  %vm263_vm0 = vcmask 1043456   ;;  %v6073_v1 = vld [vmem:[%s8682_s1 + $0x48] sm:$0xf]  ;;  %p202_p4 = scmp.lt.s32.totalorder %s7547_s12, 1 }
   0xf   : > { %6716 = vmatprep.subr.msk.mxu1 %vm263_vm0, %v237_v0  ;;  %6968 = vmatprep.subr.msk.mxu0 %vm263_vm0, %v6073_v1  ;;  %v5783_v2 = vld [vmem:[%s8682_s1 + $0x4] sm:$0xf]  ;;  %v6091_v3 = vld [vmem:[%s8682_s1 + $0x4c] sm:$0xf]  ;;  %vm238_vm1 = vcmask 31744   ;;  %vm5641_vm2 = vcmask 64512  }
  0x10   : > { %6717 = vmatpush3.msk.msra.mxu1 %vm263_vm0, %v237_v0  ;;  %s8838_s12 = smov (!%p202_p4, %s7547_s12), 1  ;;  %6969 = vmatpush3.msk.msra.mxu0 %vm263_vm0, %v6073_v1  ;;  %v5793_v10 = vld [vmem:[%s8682_s1 + $0x8] sm:$0xf]  ;;  %v6109_v11 = vld [vmem:[%s8682_s1 + $0x50] sm:$0xf] }
  0x11   : > { %6730 = vmatprep.subr.msk.mxu1 %vm263_vm0, %v5783_v2  ;;  %6982 = vmatprep.subr.msk.mxu0 %vm263_vm0, %v6091_v3  ;;  %s7508_s24 = smul.u32 640, %s8838_s12  ;;  %v5811_v28 = vld [vmem:[%s8682_s1 + $0xc] sm:$0xf]  ;;  %v6127_v29 = vld [vmem:[%s8682_s1 + $0x54] sm:$0xf]  ;;  %s6391_s28 = sshll.u32 %s8838_s12, 6 }
  0x12   : > { %v5821_v46 = vld [vmem:[%s8682_s1 + $0x10] sm:$0xf]  ;;  %v6145_v47 = vld [vmem:[%s8682_s1 + $0x58] sm:$0xf]  ;;  %v5839_v0 = vld [vmem:[%s8682_s1 + $0x14] sm:$0xf]  ;;  %s8654_s4 = scalar_lea.vmem %s8684_s3, %s6391_s28 }
  0x13   : > { %s7619_s27 = scalar_lea.vmem %s8681_s0, %s7508_s24  ;;  %v6163_v1 = vld [vmem:[%s8682_s1 + $0x5c] sm:$0xf] }
  0x14   : > { %v229_v4 = vld [vmem:[%s7619_s27] sm:$0xff]  ;;  %v7623_v5 = vld [vmem:[%s7619_s27 + $0x150] sm:$0xff] }
  0x15   : > { %v7626_v6 = vld [vmem:[%s7619_s27 + $0x10] sm:$0xff]  ;;  %6718 = vmatprep.mubr.msk.f32.mxu1 %vm238_vm1, %v229_v4  ;;  %6970 = vmatprep.mubr.msk.f32.mxu0 %vm238_vm1, %v7623_v5  ;;  %v7632_v7 = vld [vmem:[%s7619_s27 + $0x160] sm:$0xff] }
  0x16   : > { %8743 = vst [vmem:[#allocation2_spill] sm:$0xff] %v7626_v6  ;;  %v7635_v8 = vld [vmem:[%s7619_s27 + $0x20] sm:$0xff]  ;;  %v7638_v9 = vld [vmem:[%s7619_s27 + $0x170] sm:$0xff]  ;;  %6719 = vmatmul.mubr.msk.f32.vlgmr.msra.gmra.mrb[0].mxu1 %vm238_vm1, %v7626_v6  ;;  %6971 = vmatmul.mubr.msk.f32.vlgmr.msra.gmra.mrb[0].mxu0 %vm238_vm1, %v7632_v7 }
  0x17   : > { %6731 = vmatpush3.msk.msra.mxu1 %vm263_vm0, %v5783_v2  ;;  %6983 = vmatpush3.msk.msra.mxu0 %vm263_vm0, %v6091_v3  ;;  %v7653_v12 = vld [vmem:[%s7619_s27 + $0x30] sm:$0xff]  ;;  %v7656_v13 = vld [vmem:[%s7619_s27 + $0x180] sm:$0xff] }
  0x18   : > { %6721 = vmatprep.mubr.msk.f32.mxu1 %vm238_vm1, %v7635_v8  ;;  %6973 = vmatprep.mubr.msk.f32.mxu0 %vm238_vm1, %v7638_v9  ;;  %v7663_v14 = vld [vmem:[%s7619_s27 + $0x40] sm:$0xff]  ;;  %v7666_v15 = vld [vmem:[%s7619_s27 + $0x190] sm:$0xff] }
  0x19   : > { %6744 = vmatprep.subr.msk.mxu1 %vm263_vm0, %v5793_v10  ;;  %6996 = vmatprep.subr.msk.mxu0 %vm263_vm0, %v6109_v11  ;;  %v7679_v16 = vld [vmem:[%s7619_s27 + $0x50] sm:$0xff]  ;;  %v7682_v17 = vld [vmem:[%s7619_s27 + $0x1a0] sm:$0xff] }
  0x1a   : > { %6722 = vmatmul.mubr.msk.f32.gmra.mrb[2].mxu1 %vm238_vm1, %v7653_v12  ;;  %6974 = vmatmul.mubr.msk.f32.gmra.mrb[2].mxu0 %vm238_vm1, %v7656_v13  ;;  %v7685_v18 = vld [vmem:[%s7619_s27 + $0x60] sm:$0xff]  ;;  %v7688_v19 = vld [vmem:[%s7619_s27 + $0x1b0] sm:$0xff] }
  0x1b   : > { %6724 = vmatprep.mubr.msk.f32.mxu1 %vm238_vm1, %v7663_v14  ;;  %6976 = vmatprep.mubr.msk.f32.mxu0 %vm238_vm1, %v7666_v15  ;;  %v7699_v20 = vld [vmem:[%s7619_s27 + $0x70] sm:$0xff]  ;;  %v7702_v21 = vld [vmem:[%s7619_s27 + $0x1c0] sm:$0xff] }
  0x1c   : > { %8744 = vst [vmem:[#allocation3_spill] sm:$0xff] %v7702_v21  ;;  %v5775_v22 = vld [vmem:[%s7619_s27 + $0xa0] sm:$0xff]  ;;  %v7706_v23 = vld [vmem:[%s7619_s27 + $0x1f0] sm:$0xff] }
  0x1d   : > { %v7716_v24 = vld [vmem:[%s7619_s27 + $0xb0] sm:$0xff]  ;;  %v7719_v25 = vld [vmem:[%s7619_s27 + $0x200] sm:$0xff] }
  0x1e   : > { %6725 = vmatmul.mubr.msk.f32.gmra.mrb[4].mxu1 %vm238_vm1, %v7679_v16  ;;  %6977 = vmatmul.mubr.msk.f32.gmra.mrb[4].mxu0 %vm238_vm1, %v7682_v17  ;;  %8745 = vst [vmem:[#allocation4_spill] sm:$0xff] %v7716_v24  ;;  %v7722_v26 = vld [vmem:[%s7619_s27 + $0xc0] sm:$0xff]  ;;  %v7725_v27 = vld [vmem:[%s7619_s27 + $0x210] sm:$0xff] }
  0x1f   : > { %6727 = vmatprep.mubr.msk.f32.mxu1 %vm238_vm1, %v7685_v18  ;;  %6979 = vmatprep.mubr.msk.f32.mxu0 %vm238_vm1, %v7688_v19  ;;  %v7740_v30 = vld [vmem:[%s7619_s27 + $0xd0] sm:$0xff]  ;;  %v7743_v31 = vld [vmem:[%s7619_s27 + $0x220] sm:$0xff] }
  0x20   : > { %v7750_v32 = vld [vmem:[%s7619_s27 + $0xe0] sm:$0xff]  ;;  %v7753_v33 = vld [vmem:[%s7619_s27 + $0x230] sm:$0xff] }
  0x21   : > { %v7766_v34 = vld [vmem:[%s7619_s27 + $0xf0] sm:$0xff]  ;;  %v7769_v35 = vld [vmem:[%s7619_s27 + $0x240] sm:$0xff] }
  0x22   : > { %6728 = vmatmul.mubr.msk.f32.gmra.mrb[6].mxu1 %vm238_vm1, %v7699_v20  ;;  %6980 = vmatmul.mubr.msk.f32.gmra.mrb[6].mxu0 %vm238_vm1, %v7702_v21  ;;  %v7772_v36 = vld [vmem:[%s7619_s27 + $0x100] sm:$0xff]  ;;  %v7775_v37 = vld [vmem:[%s7619_s27 + $0x250] sm:$0xff] }
  0x23   : > { %6732 = vmatprep.mubr.msk.f32.mxu1 %vm238_vm1, %v5775_v22  ;;  %6984 = vmatprep.mubr.msk.f32.mxu0 %vm238_vm1, %v7706_v23  ;;  %v7786_v38 = vld [vmem:[%s7619_s27 + $0x110] sm:$0xff]  ;;  %v7789_v39 = vld [vmem:[%s7619_s27 + $0x260] sm:$0xff] }
  0x24   : > { %8746 = vst [vmem:[#allocation5_spill] sm:$0xff] %v7789_v39  ;;  %v531_v40 = vld [vmem:[%s7619_s27 + $0x1] sm:$0xff]  ;;  %v7793_v41 = vld [vmem:[%s7619_s27 + $0x151] sm:$0xff] }
  0x25   : > { %v7803_v42 = vld [vmem:[%s7619_s27 + $0x11] sm:$0xff]  ;;  %v7806_v43 = vld [vmem:[%s7619_s27 + $0x161] sm:$0xff] }
  0x26   : > { %6733 = vmatmul.mubr.msk.f32.vlgmr.msra.gmra.mrb[0].mxu1 %vm238_vm1, %v7716_v24  ;;  %6985 = vmatmul.mubr.msk.f32.vlgmr.msra.gmra.mrb[0].mxu0 %vm238_vm1, %v7719_v25  ;;  %8747 = vst [vmem:[#allocation6_spill] sm:$0xff] %v7803_v42  ;;  %v7809_v44 = vld [vmem:[%s7619_s27 + $0x21] sm:$0xff]  ;;  %v7812_v45 = vld [vmem:[%s7619_s27 + $0x171] sm:$0xff] }
  0x27   : > { %6745 = vmatpush3.msk.msra.mxu1 %vm263_vm0, %v5793_v10  ;;  %6997 = vmatpush3.msk.msra.mxu0 %vm263_vm0, %v6109_v11  ;;  %v7827_v48 = vld [vmem:[%s7619_s27 + $0x31] sm:$0xff]  ;;  %v7830_v49 = vld [vmem:[%s7619_s27 + $0x181] sm:$0xff] }
  0x28   : > { %6735 = vmatprep.mubr.msk.f32.mxu1 %vm238_vm1, %v7722_v26  ;;  %6987 = vmatprep.mubr.msk.f32.mxu0 %vm238_vm1, %v7725_v27  ;;  %v7837_v50 = vld [vmem:[%s7619_s27 + $0x41] sm:$0xff]  ;;  %v7840_v51 = vld [vmem:[%s7619_s27 + $0x191] sm:$0xff] }
  0x29   : > { %6758 = vmatprep.subr.msk.mxu1 %vm263_vm0, %v5811_v28  ;;  %7010 = vmatprep.subr.msk.mxu0 %vm263_vm0, %v6127_v29  ;;  %v7853_v52 = vld [vmem:[%s7619_s27 + $0x51] sm:$0xff]  ;;  %v7856_v53 = vld [vmem:[%s7619_s27 + $0x1a1] sm:$0xff] }
  0x2a   : > { %6736 = vmatmul.mubr.msk.f32.gmra.mrb[2].mxu1 %vm238_vm1, %v7740_v30  ;;  %6988 = vmatmul.mubr.msk.f32.gmra.mrb[2].mxu0 %vm238_vm1, %v7743_v31  ;;  %v7859_v54 = vld [vmem:[%s7619_s27 + $0x61] sm:$0xff]  ;;  %v7862_v55 = vld [vmem:[%s7619_s27 + $0x1b1] sm:$0xff] }
  0x2b   : > { %6738 = vmatprep.mubr.msk.f32.mxu1 %vm238_vm1, %v7750_v32  ;;  %6990 = vmatprep.mubr.msk.f32.mxu0 %vm238_vm1, %v7753_v33  ;;  %v7873_v56 = vld [vmem:[%s7619_s27 + $0x71] sm:$0xff]  ;;  %v7876_v57 = vld [vmem:[%s7619_s27 + $0x1c1] sm:$0xff] }
  0x2c   : > { %8748 = vst [vmem:[#allocation7_spill] sm:$0xff] %v7876_v57  ;;  %v5803_v58 = vld [vmem:[%s7619_s27 + $0xa1] sm:$0xff]  ;;  %v7880_v59 = vld [vmem:[%s7619_s27 + $0x1f1] sm:$0xff] }
  0x2d   : > { %v7890_v60 = vld [vmem:[%s7619_s27 + $0xb1] sm:$0xff]  ;;  %v7893_v61 = vld [vmem:[%s7619_s27 + $0x201] sm:$0xff] }
  0x2e   : > { %6739 = vmatmul.mubr.msk.f32.gmra.mrb[4].mxu1 %vm238_vm1, %v7766_v34  ;;  %6991 = vmatmul.mubr.msk.f32.gmra.mrb[4].mxu0 %vm238_vm1, %v7769_v35  ;;  %8749 = vst [vmem:[#allocation8_spill] sm:$0xff] %v7890_v60  ;;  %v7896_v62 = vld [vmem:[%s7619_s27 + $0xc1] sm:$0xff]  ;;  %v7899_v63 = vld [vmem:[%s7619_s27 + $0x211] sm:$0xff] }
  0x2f   : > { %6741 = vmatprep.mubr.msk.f32.mxu1 %vm238_vm1, %v7772_v36  ;;  %6993 = vmatprep.mubr.msk.f32.mxu0 %vm238_vm1, %v7775_v37  ;;  %v7914_v2 = vld [vmem:[%s7619_s27 + $0xd1] sm:$0xff]  ;;  %v7917_v3 = vld [vmem:[%s7619_s27 + $0x221] sm:$0xff] }
  0x30   : > { %v7924_v4 = vld [vmem:[%s7619_s27 + $0xe1] sm:$0xff]  ;;  %v7927_v10 = vld [vmem:[%s7619_s27 + $0x231] sm:$0xff] }
  0x31   : > { %v7940_v11 = vld [vmem:[%s7619_s27 + $0xf1] sm:$0xff]  ;;  %v7943_v22 = vld [vmem:[%s7619_s27 + $0x241] sm:$0xff] }
  0x32   : > { %6742 = vmatmul.mubr.msk.f32.gmra.mrb[6].mxu1 %vm238_vm1, %v7786_v38  ;;  %6994 = vmatmul.mubr.msk.f32.gmra.mrb[6].mxu0 %vm238_vm1, %v7789_v39  ;;  %v7986_v39 = vld [vmem:[%s7619_s27 + $0x172] sm:$0xff]  ;;  %v8004_v24 = vld [vmem:[%s7619_s27 + $0x182] sm:$0xff] }
  0x33   : > { %6746 = vmatprep.mubr.msk.f32.mxu1 %vm238_vm1, %v531_v40  ;;  %6998 = vmatprep.mubr.msk.f32.mxu0 %vm238_vm1, %v7793_v41  ;;  %v7960_v40 = vld [vmem:[%s7619_s27 + $0x111] sm:$0xff]  ;;  %8756 = vst [vmem:[#allocation15_spill] sm:$0xff] %v7986_v39  ;;  %8758 = vst [vmem:[#allocation17_spill] sm:$0xff] %v8004_v24  ;;  %v8011_v21 = vld [vmem:[%s7619_s27 + $0x42] sm:$0xff] }
  0x34   : > { %8751 = vst [vmem:[#allocation10_spill] sm:$0xff] %v7960_v40  ;;  %8759 = vst [vmem:[#allocation18_spill] sm:$0xff] %v8011_v21  ;;  %v8014_v6 = vld [vmem:[%s7619_s27 + $0x192] sm:$0xff] }
  0x35   : > { %8760 = vst [vmem:[#allocation19_spill] sm:$0xff] %v8014_v6 }
  0x36   : > { %6747 = vmatmul.mubr.msk.f32.vlgmr.msra.gmra.mrb[0].mxu1 %vm238_vm1, %v7803_v42  ;;  %6999 = vmatmul.mubr.msk.f32.vlgmr.msra.gmra.mrb[0].mxu0 %vm238_vm1, %v7806_v43  ;;  %v7983_v42 = vld [vmem:[%s7619_s27 + $0x22] sm:$0xff] }
  0x37   : > { %6759 = vmatpush3.msk.msra.mxu1 %vm263_vm0, %v5811_v28  ;;  %7011 = vmatpush3.msk.msra.mxu0 %vm263_vm0, %v6127_v29  ;;  %v7946_v28 = vld [vmem:[%s7619_s27 + $0x101] sm:$0xff]  ;;  %v7949_v29 = vld [vmem:[%s7619_s27 + $0x251] sm:$0xff]  ;;  %8755 = vst [vmem:[#allocation14_spill] sm:$0xff] %v7983_v42 }
  0x38   : > { %6749 = vmatprep.mubr.msk.f32.mxu1 %vm238_vm1, %v7809_v44  ;;  %7001 = vmatprep.mubr.msk.f32.mxu0 %vm238_vm1, %v7812_v45  ;;  %8750 = vst [vmem:[#allocation9_spill] sm:$0xff] %v7949_v29 }
  0x39   : > { %6772 = vmatprep.subr.msk.mxu1 %vm263_vm0, %v5821_v46  ;;  %7024 = vmatprep.subr.msk.mxu0 %vm263_vm0, %v6145_v47 }
  0x3a   : > { %6750 = vmatmul.mubr.msk.f32.gmra.mrb[2].mxu1 %vm238_vm1, %v7827_v48  ;;  %7002 = vmatmul.mubr.msk.f32.gmra.mrb[2].mxu0 %vm238_vm1, %v7830_v49 }
  0x3b   : > { %6752 = vmatprep.mubr.msk.f32.mxu1 %vm238_vm1, %v7837_v50  ;;  %7004 = vmatprep.mubr.msk.f32.mxu0 %vm238_vm1, %v7840_v51 }
  0x3e   : > { %6753 = vmatmul.mubr.msk.f32.gmra.mrb[4].mxu1 %vm238_vm1, %v7853_v52  ;;  %7005 = vmatmul.mubr.msk.f32.gmra.mrb[4].mxu0 %vm238_vm1, %v7856_v53 }
  0x3f   : > { %6755 = vmatprep.mubr.msk.f32.mxu1 %vm238_vm1, %v7859_v54  ;;  %7007 = vmatprep.mubr.msk.f32.mxu0 %vm238_vm1, %v7862_v55 }
  0x42   : > { %6756 = vmatmul.mubr.msk.f32.gmra.mrb[6].mxu1 %vm238_vm1, %v7873_v56  ;;  %7008 = vmatmul.mubr.msk.f32.gmra.mrb[6].mxu0 %vm238_vm1, %v7876_v57  ;;  %v7980_v57 = vld [vmem:[%s7619_s27 + $0x162] sm:$0xff] }
  0x43   : > { %6760 = vmatprep.mubr.msk.f32.mxu1 %vm238_vm1, %v5803_v58  ;;  %7012 = vmatprep.mubr.msk.f32.mxu0 %vm238_vm1, %v7880_v59  ;;  %v7967_v58 = vld [vmem:[%s7619_s27 + $0x152] sm:$0xff]  ;;  %8754 = vst [vmem:[#allocation13_spill] sm:$0xff] %v7980_v57 }
  0x46   : > { %6761 = vmatmul.mubr.msk.f32.vlgmr.msra.gmra.mrb[0].mxu1 %vm238_vm1, %v7890_v60  ;;  %7013 = vmatmul.mubr.msk.f32.vlgmr.msra.gmra.mrb[0].mxu0 %vm238_vm1, %v7893_v61  ;;  %v7977_v60 = vld [vmem:[%s7619_s27 + $0x12] sm:$0xff] }
  0x47   : > { %6773 = vmatpush3.msk.msra.mxu1 %vm263_vm0, %v5821_v46  ;;  %7025 = vmatpush3.msk.msra.mxu0 %vm263_vm0, %v6145_v47  ;;  %v7963_v46 = vld [vmem:[%s7619_s27 + $0x261] sm:$0xff]  ;;  %8753 = vst [vmem:[#allocation12_spill] sm:$0xff] %v7977_v60 }
  0x48   : > { %6763 = vmatprep.mubr.msk.f32.mxu1 %vm238_vm1, %v7896_v62  ;;  %7015 = vmatprep.mubr.msk.f32.mxu0 %vm238_vm1, %v7899_v63  ;;  %8752 = vst [vmem:[#allocation11_spill] sm:$0xff] %v7963_v46  ;;  %v831_v47 = vld [vmem:[%s7619_s27 + $0x2] sm:$0xff] }
  0x49   : > { %6786 = vmatprep.subr.msk.mxu1 %vm263_vm0, %v5839_v0  ;;  %7038 = vmatprep.subr.msk.mxu0 %vm263_vm0, %v6163_v1 }
  0x4a   : > { %6764 = vmatmul.mubr.msk.f32.gmra.mrb[2].mxu1 %vm238_vm1, %v7914_v2  ;;  %7016 = vmatmul.mubr.msk.f32.gmra.mrb[2].mxu0 %vm238_vm1, %v7917_v3 }
  0x4b   : > { %6766 = vmatprep.mubr.msk.f32.mxu1 %vm238_vm1, %v7924_v4  ;;  %7018 = vmatprep.mubr.msk.f32.mxu0 %vm238_vm1, %v7927_v10 }
  0x4e   : > { %6767 = vmatmul.mubr.msk.f32.gmra.mrb[4].mxu1 %vm238_vm1, %v7940_v11  ;;  %7019 = vmatmul.mubr.msk.f32.gmra.mrb[4].mxu0 %vm238_vm1, %v7943_v22 }
  0x4f   : > { %6769 = vmatprep.mubr.msk.f32.mxu1 %vm238_vm1, %v7946_v28  ;;  %7021 = vmatprep.mubr.msk.f32.mxu0 %vm238_vm1, %v7949_v29 }
  0x52   : > { %6770 = vmatmul.mubr.msk.f32.gmra.mrb[6].mxu1 %vm238_vm1, %v7960_v40  ;;  %7022 = vmatmul.mubr.msk.f32.gmra.mrb[6].mxu0 %vm238_vm1, %v7963_v46  ;;  %v6181_v46 = vld [vmem:[%s8682_s1 + $0x60] sm:$0xf] }
  0x53   : > { %6774 = vmatprep.mubr.msk.f32.mxu1 %vm238_vm1, %v831_v47  ;;  %7026 = vmatprep.mubr.msk.f32.mxu0 %vm238_vm1, %v7967_v58  ;;  %v5857_v47 = vld [vmem:[%s8682_s1 + $0x18] sm:$0xf] }
  0x56   : > { %6775 = vmatmul.mubr.msk.f32.vlgmr.msra.gmra.mrb[0].mxu1 %vm238_vm1, %v7977_v60  ;;  %7027 = vmatmul.mubr.msk.f32.vlgmr.msra.gmra.mrb[0].mxu0 %vm238_vm1, %v7980_v57  ;;  %v8001_v60 = vld [vmem:[%s7619_s27 + $0x32] sm:$0xff] }
  0x57   : > { %6787 = vmatpush3.msk.msra.mxu1 %vm263_vm0, %v5839_v0  ;;  %7039 = vmatpush3.msk.msra.mxu0 %vm263_vm0, %v6163_v1  ;;  %8757 = vst [vmem:[#allocation16_spill] sm:$0xff] %v8001_v60  ;;  %v8027_v0 = vld [vmem:[%s7619_s27 + $0x52] sm:$0xff]  ;;  %v8030_v1 = vld [vmem:[%s7619_s27 + $0x1a2] sm:$0xff] }
  0x58   : > { %6777 = vmatprep.mubr.msk.f32.mxu1 %vm238_vm1, %v7983_v42  ;;  %7029 = vmatprep.mubr.msk.f32.mxu0 %vm238_vm1, %v7986_v39  ;;  %8761 = vst [vmem:[#allocation20_spill] sm:$0xff] %v8027_v0  ;;  %8762 = vst [vmem:[#allocation21_spill] sm:$0xff] %v8030_v1  ;;  %v8033_v39 = vld [vmem:[%s7619_s27 + $0x62] sm:$0xff]  ;;  %v8036_v57 = vld [vmem:[%s7619_s27 + $0x1b2] sm:$0xff] }
  0x59   : > { %6800 = vmatprep.subr.msk.mxu1 %vm263_vm0, %v5857_v47  ;;  %7052 = vmatprep.subr.msk.mxu0 %vm263_vm0, %v6181_v46  ;;  %8763 = vst [vmem:[#allocation22_spill] sm:$0xff] %v8033_v39  ;;  %8764 = vst [vmem:[#allocation23_spill] sm:$0xff] %v8036_v57 }
  0x5a   : > { %6778 = vmatmul.mubr.msk.f32.gmra.mrb[2].mxu1 %vm238_vm1, %v8001_v60  ;;  %7030 = vmatmul.mubr.msk.f32.gmra.mrb[2].mxu0 %vm238_vm1, %v8004_v24  ;;  %v8050_v24 = vld [vmem:[%s7619_s27 + $0x1c2] sm:$0xff]  ;;  %v8054_v60 = vld [vmem:[%s7619_s27 + $0x1f2] sm:$0xff] }
  0x5b   : > { %6780 = vmatprep.mubr.msk.f32.mxu1 %vm238_vm1, %v8011_v21  ;;  %7032 = vmatprep.mubr.msk.f32.mxu0 %vm238_vm1, %v8014_v6  ;;  %v8047_v6 = vld [vmem:[%s7619_s27 + $0x72] sm:$0xff]  ;;  %8766 = vst [vmem:[#allocation25_spill] sm:$0xff] %v8050_v24  ;;  %v5831_v21 = vld [vmem:[%s7619_s27 + $0xa2] sm:$0xff]  ;;  %8767 = vst [vmem:[#allocation26_spill] sm:$0xff] %v8054_v60 }
  0x5c   : > { %8765 = vst [vmem:[#allocation24_spill] sm:$0xff] %v8047_v6 }
  0x5e   : > { %6781 = vmatmul.mubr.msk.f32.gmra.mrb[4].mxu1 %vm238_vm1, %v8027_v0  ;;  %7033 = vmatmul.mubr.msk.f32.gmra.mrb[4].mxu0 %vm238_vm1, %v8030_v1  ;;  %v8067_v1 = vld [vmem:[%s7619_s27 + $0x202] sm:$0xff]  ;;  %v8073_v0 = vld [vmem:[%s7619_s27 + $0x212] sm:$0xff] }
  0x5f   : > { %6783 = vmatprep.mubr.msk.f32.mxu1 %vm238_vm1, %v8033_v39  ;;  %7035 = vmatprep.mubr.msk.f32.mxu0 %vm238_vm1, %v8036_v57  ;;  %v8064_v57 = vld [vmem:[%s7619_s27 + $0xb2] sm:$0xff]  ;;  %8769 = vst [vmem:[#allocation28_spill] sm:$0xff] %v8067_v1  ;;  %v8070_v39 = vld [vmem:[%s7619_s27 + $0xc2] sm:$0xff]  ;;  %8771 = vst [vmem:[#allocation30_spill] sm:$0xff] %v8073_v0 }
  0x60   : > { %8768 = vst [vmem:[#allocation27_spill] sm:$0xff] %v8064_v57  ;;  %8770 = vst [vmem:[#allocation29_spill] sm:$0xff] %v8070_v39 }
  0x62   : > { %6784 = vmatmul.mubr.msk.f32.gmra.mrb[6].mxu1 %vm238_vm1, %v8047_v6  ;;  %7036 = vmatmul.mubr.msk.f32.gmra.mrb[6].mxu0 %vm238_vm1, %v8050_v24  ;;  %v6199_v24 = vld [vmem:[%s8682_s1 + $0x64] sm:$0xf]  ;;  %v8101_v6 = vld [vmem:[%s7619_s27 + $0x232] sm:$0xff] }
  0x63   : > { %6788 = vmatprep.mubr.msk.f32.mxu1 %vm238_vm1, %v5831_v21  ;;  %7040 = vmatprep.mubr.msk.f32.mxu0 %vm238_vm1, %v8054_v60  ;;  %v5875_v21 = vld [vmem:[%s8682_s1 + $0x1c] sm:$0xf]  ;;  %v8091_v60 = vld [vmem:[%s7619_s27 + $0x222] sm:$0xff]  ;;  %8775 = vst [vmem:[#allocation34_spill] sm:$0xff] %v8101_v6 }
  0x64   : > { %8773 = vst [vmem:[#allocation32_spill] sm:$0xff] %v8091_v60 }
  0x66   : > { %6789 = vmatmul.mubr.msk.f32.vlgmr.msra.gmra.mrb[0].mxu1 %vm238_vm1, %v8064_v57  ;;  %7041 = vmatmul.mubr.msk.f32.vlgmr.msra.gmra.mrb[0].mxu0 %vm238_vm1, %v8067_v1  ;;  %v8088_v57 = vld [vmem:[%s7619_s27 + $0xd2] sm:$0xff]  ;;  %v8098_v1 = vld [vmem:[%s7619_s27 + $0xe2] sm:$0xff] }
  0x67   : > { %6801 = vmatpush3.msk.msra.mxu1 %vm263_vm0, %v5857_v47  ;;  %7053 = vmatpush3.msk.msra.mxu0 %vm263_vm0, %v6181_v46  ;;  %8772 = vst [vmem:[#allocation31_spill] sm:$0xff] %v8088_v57  ;;  %8774 = vst [vmem:[#allocation33_spill] sm:$0xff] %v8098_v1  ;;  %v8114_v46 = vld [vmem:[%s7619_s27 + $0xf2] sm:$0xff]  ;;  %v8117_v47 = vld [vmem:[%s7619_s27 + $0x242] sm:$0xff] }
  0x68   : > { %6791 = vmatprep.mubr.msk.f32.mxu1 %vm238_vm1, %v8070_v39  ;;  %7043 = vmatprep.mubr.msk.f32.mxu0 %vm238_vm1, %v8073_v0  ;;  %8776 = vst [vmem:[#allocation35_spill] sm:$0xff] %v8114_v46  ;;  %v8120_v0 = vld [vmem:[%s7619_s27 + $0x102] sm:$0xff]  ;;  %v8123_v39 = vld [vmem:[%s7619_s27 + $0x252] sm:$0xff] }
  0x69   : > { %6814 = vmatprep.subr.msk.mxu1 %vm263_vm0, %v5875_v21  ;;  %7066 = vmatprep.subr.msk.mxu0 %vm263_vm0, %v6199_v24  ;;  %8777 = vst [vmem:[#allocation36_spill] sm:$0xff] %v8120_v0  ;;  %8778 = vst [vmem:[#allocation37_spill] sm:$0xff] %v8123_v39 }
  0x6a   : > { %6792 = vmatmul.mubr.msk.f32.gmra.mrb[2].mxu1 %vm238_vm1, %v8088_v57  ;;  %7044 = vmatmul.mubr.msk.f32.gmra.mrb[2].mxu0 %vm238_vm1, %v8091_v60  ;;  %v8137_v60 = vld [vmem:[%s7619_s27 + $0x262] sm:$0xff] }
  0x6b   : > { %6794 = vmatprep.mubr.msk.f32.mxu1 %vm238_vm1, %v8098_v1  ;;  %7046 = vmatprep.mubr.msk.f32.mxu0 %vm238_vm1, %v8101_v6  ;;  %v8134_v6 = vld [vmem:[%s7619_s27 + $0x112] sm:$0xff]  ;;  %8779 = vst [vmem:[#allocation38_spill] sm:$0xff] %v8137_v60  ;;  %v5849_v1 = vld [vmem:[%s7619_s27 + $0x140] sm:$0xff] }
  0x6e   : > { %6795 = vmatmul.mubr.msk.f32.gmra.mrb[4].mxu1 %vm238_vm1, %v8114_v46  ;;  %7047 = vmatmul.mubr.msk.f32.gmra.mrb[4].mxu0 %vm238_vm1, %v8117_v47 }
  0x6f   : > { %6797 = vmatprep.mubr.msk.f32.mxu1 %vm238_vm1, %v8120_v0  ;;  %7049 = vmatprep.mubr.msk.f32.mxu0 %vm238_vm1, %v8123_v39  ;;  %v5893_v39 = vld [vmem:[%s8682_s1 + $0x20] sm:$0xf] }
  0x72   : > { %6798 = vmatmul.mubr.msk.f32.gmra.mrb[6].mxu1 %vm238_vm1, %v8134_v6  ;;  %7050 = vmatmul.mubr.msk.f32.gmra.mrb[6].mxu0 %vm238_vm1, %v8137_v60  ;;  %v6217_v60 = vld [vmem:[%s8682_s1 + $0x68] sm:$0xf] }
  0x73   : > { %6802 = vmatprep.mubr.msk.f32.mxu1 %vm238_vm1, %v5849_v1  ;;  %7054 = vmatprep.mubr.msk.f32.mxu0 %vm238_vm1, %v7635_v8  ;;  %v5867_v1 = vld [vmem:[%s7619_s27 + $0x1e0] sm:$0xff] }
  0x76   : > { %6803 = vmatmul.mubr.msk.f32.vlgmr.msra.gmra.mrb[0].mxu1 %vm238_vm1, %v7623_v5  ;;  %7055 = vmatmul.mubr.msk.f32.vlgmr.msra.gmra.mrb[0].mxu0 %vm238_vm1, %v7653_v12  ;;  %v8174_v5 = vld [vmem:[%s7619_s27 + $0x80] sm:$0xff] }
  0x77   : > { %6815 = vmatpush3.msk.msra.mxu1 %vm263_vm0, %v5875_v21  ;;  %7067 = vmatpush3.msk.msra.mxu0 %vm263_vm0, %v6199_v24  ;;  %v6180_v24 = vld [vmem:[%s7619_s27 + $0x90] sm:$0xff]  ;;  %v5911_v21 = vld [vmem:[%s8682_s1 + $0x24] sm:$0xf] }
  0x78   : > { %6805 = vmatprep.mubr.msk.f32.mxu1 %vm238_vm1, %v7632_v7  ;;  %7057 = vmatprep.mubr.msk.f32.mxu0 %vm238_vm1, %v7663_v14 }
  0x79   : > { %6828 = vmatprep.subr.msk.mxu1 %vm263_vm0, %v5893_v39  ;;  %7080 = vmatprep.subr.msk.mxu0 %vm263_vm0, %v6217_v60 }
  0x7a   : > { %6806 = vmatmul.mubr.msk.f32.gmra.mrb[2].mxu1 %vm238_vm1, %v7638_v9  ;;  %7058 = vmatmul.mubr.msk.f32.gmra.mrb[2].mxu0 %vm238_vm1, %v7679_v16 }
  0x7b   : > { %6808 = vmatprep.mubr.msk.f32.mxu1 %vm238_vm1, %v7656_v13  ;;  %7060 = vmatprep.mubr.msk.f32.mxu0 %vm238_vm1, %v7685_v18 }
  0x7e   : > { %6809 = vmatmul.mubr.msk.f32.gmra.mrb[4].mxu1 %vm238_vm1, %v7666_v15  ;;  %7061 = vmatmul.mubr.msk.f32.gmra.mrb[4].mxu0 %vm238_vm1, %v7699_v20 }
  0x7f   : > { %6811 = vmatprep.mubr.msk.f32.mxu1 %vm238_vm1, %v7682_v17  ;;  %7063 = vmatprep.mubr.msk.f32.mxu0 %vm238_vm1, %v8174_v5 }
  0x82   : > { %6812 = vmatmul.mubr.msk.f32.gmra.mrb[6].mxu1 %vm238_vm1, %v7688_v19  ;;  %7064 = vmatmul.mubr.msk.f32.gmra.mrb[6].mxu0 %vm238_vm1, %v6180_v24  ;;  %v6235_v24 = vld [vmem:[%s8682_s1 + $0x6c] sm:$0xf] }
  0x83   : > { %6816 = vmatprep.mubr.msk.f32.mxu1 %vm238_vm1, %v5867_v1  ;;  %7068 = vmatprep.mubr.msk.f32.mxu0 %vm238_vm1, %v7722_v26  ;;  %v5929_v1 = vld [vmem:[%s8682_s1 + $0x28] sm:$0xf] }
  0x86   : > { %6817 = vmatmul.mubr.msk.f32.vlgmr.msra.gmra.mrb[0].mxu1 %vm238_vm1, %v7706_v23  ;;  %7069 = vmatmul.mubr.msk.f32.vlgmr.msra.gmra.mrb[0].mxu0 %vm238_vm1, %v7740_v30  ;;  %v8219_v23 = vld [vmem:[%s7619_s27 + $0x120] sm:$0xff] }
  0x87   : > { %6829 = vmatpush3.msk.msra.mxu1 %vm263_vm0, %v5893_v39  ;;  %7081 = vmatpush3.msk.msra.mxu0 %vm263_vm0, %v6217_v60  ;;  %v6198_v39 = vld [vmem:[%s7619_s27 + $0x130] sm:$0xff]  ;;  %v5885_v60 = vld [vmem:[%s7619_s27 + $0x141] sm:$0xff] }
  0x88   : > { %6819 = vmatprep.mubr.msk.f32.mxu1 %vm238_vm1, %v7719_v25  ;;  %7071 = vmatprep.mubr.msk.f32.mxu0 %vm238_vm1, %v7750_v32 }
  0x89   : > { %6842 = vmatprep.subr.msk.mxu1 %vm263_vm0, %v5911_v21  ;;  %7094 = vmatprep.subr.msk.mxu0 %vm263_vm0, %v6235_v24 }
  0x8a   : > { %6820 = vmatmul.mubr.msk.f32.gmra.mrb[2].mxu1 %vm238_vm1, %v7725_v27  ;;  %7072 = vmatmul.mubr.msk.f32.gmra.mrb[2].mxu0 %vm238_vm1, %v7766_v34 }
  0x8b   : > { %6822 = vmatprep.mubr.msk.f32.mxu1 %vm238_vm1, %v7743_v31  ;;  %7074 = vmatprep.mubr.msk.f32.mxu0 %vm238_vm1, %v7772_v36 }
  0x8e   : > { %6823 = vmatmul.mubr.msk.f32.gmra.mrb[4].mxu1 %vm238_vm1, %v7753_v33  ;;  %7075 = vmatmul.mubr.msk.f32.gmra.mrb[4].mxu0 %vm238_vm1, %v7786_v38 }
  0x8f   : > { %6825 = vmatprep.mubr.msk.f32.mxu1 %vm238_vm1, %v7769_v35  ;;  %7077 = vmatprep.mubr.msk.f32.mxu0 %vm238_vm1, %v8219_v23 }
  0x92   : > { %6826 = vmatmul.mubr.msk.f32.gmra.mrb[6].mxu1 %vm238_vm1, %v7775_v37  ;;  %7078 = vmatmul.mubr.msk.f32.gmra.mrb[6].mxu0 %vm238_vm1, %v6198_v39  ;;  %v6253_v39 = vld [vmem:[%s8682_s1 + $0x70] sm:$0xf] }
  0x93   : > { %6830 = vmatprep.mubr.msk.f32.mxu1 %vm238_vm1, %v5885_v60  ;;  %7082 = vmatprep.mubr.msk.f32.mxu0 %vm238_vm1, %v7809_v44  ;;  %v5947_v60 = vld [vmem:[%s8682_s1 + $0x2c] sm:$0xf] }
  0x96   : > { %6831 = vmatmul.mubr.msk.f32.vlgmr.msra.gmra.mrb[0].mxu1 %vm238_vm1, %v7793_v41  ;;  %7083 = vmatmul.mubr.msk.f32.vlgmr.msra.gmra.mrb[0].mxu0 %vm238_vm1, %v7827_v48  ;;  %v8264_v41 = vld [vmem:[%s7619_s27 + $0x81] sm:$0xff] }
  0x97   : > { %6843 = vmatpush3.msk.msra.mxu1 %vm263_vm0, %v5911_v21  ;;  %7095 = vmatpush3.msk.msra.mxu0 %vm263_vm0, %v6235_v24  ;;  %v6216_v21 = vld [vmem:[%s7619_s27 + $0x91] sm:$0xff]  ;;  %v5903_v24 = vld [vmem:[%s7619_s27 + $0x1e1] sm:$0xff] }
  0x98   : > { %6833 = vmatprep.mubr.msk.f32.mxu1 %vm238_vm1, %v7806_v43  ;;  %7085 = vmatprep.mubr.msk.f32.mxu0 %vm238_vm1, %v7837_v50 }
  0x99   : > { %6856 = vmatprep.subr.msk.mxu1 %vm263_vm0, %v5929_v1  ;;  %7108 = vmatprep.subr.msk.mxu0 %vm263_vm0, %v6253_v39 }
  0x9a   : > { %6834 = vmatmul.mubr.msk.f32.gmra.mrb[2].mxu1 %vm238_vm1, %v7812_v45  ;;  %7086 = vmatmul.mubr.msk.f32.gmra.mrb[2].mxu0 %vm238_vm1, %v7853_v52 }
  0x9b   : > { %6836 = vmatprep.mubr.msk.f32.mxu1 %vm238_vm1, %v7830_v49  ;;  %7088 = vmatprep.mubr.msk.f32.mxu0 %vm238_vm1, %v7859_v54 }
  0x9e   : > { %6837 = vmatmul.mubr.msk.f32.gmra.mrb[4].mxu1 %vm238_vm1, %v7840_v51  ;;  %7089 = vmatmul.mubr.msk.f32.gmra.mrb[4].mxu0 %vm238_vm1, %v7873_v56 }
  0x9f   : > { %6839 = vmatprep.mubr.msk.f32.mxu1 %vm238_vm1, %v7856_v53  ;;  %7091 = vmatprep.mubr.msk.f32.mxu0 %vm238_vm1, %v8264_v41 }
  0xa2   : > { %6840 = vmatmul.mubr.msk.f32.gmra.mrb[6].mxu1 %vm238_vm1, %v7862_v55  ;;  %7092 = vmatmul.mubr.msk.f32.gmra.mrb[6].mxu0 %vm238_vm1, %v6216_v21  ;;  %v6271_v21 = vld [vmem:[%s8682_s1 + $0x74] sm:$0xf] }
  0xa3   : > { %6844 = vmatprep.mubr.msk.f32.mxu1 %vm238_vm1, %v5903_v24  ;;  %7096 = vmatprep.mubr.msk.f32.mxu0 %vm238_vm1, %v7896_v62  ;;  %v8781_v24 = vld [vmem:[#allocation16_spill] sm:$0xff] }
  0xa6   : > { %6845 = vmatmul.mubr.msk.f32.vlgmr.msra.gmra.mrb[0].mxu1 %vm238_vm1, %v7880_v59  ;;  %7097 = vmatmul.mubr.msk.f32.vlgmr.msra.gmra.mrb[0].mxu0 %vm238_vm1, %v7914_v2  ;;  %v8309_v59 = vld [vmem:[%s7619_s27 + $0x121] sm:$0xff] }
  0xa7   : > { %6857 = vmatpush3.msk.msra.mxu1 %vm263_vm0, %v5929_v1  ;;  %7109 = vmatpush3.msk.msra.mxu0 %vm263_vm0, %v6253_v39  ;;  %8780 = vst [vmem:[#allocation39_spill] sm:$0xff] %v8309_v59  ;;  %v6234_v1 = vld [vmem:[%s7619_s27 + $0x131] sm:$0xff]  ;;  %v5921_v39 = vld [vmem:[%s7619_s27 + $0x142] sm:$0xff] }
  0xa8   : > { %6847 = vmatprep.mubr.msk.f32.mxu1 %vm238_vm1, %v7893_v61  ;;  %7099 = vmatprep.mubr.msk.f32.mxu0 %vm238_vm1, %v7924_v4 }
  0xa9   : > { %6870 = vmatprep.subr.msk.mxu1 %vm263_vm0, %v5947_v60  ;;  %7122 = vmatprep.subr.msk.mxu0 %vm263_vm0, %v6271_v21 }
  0xaa   : > { %6848 = vmatmul.mubr.msk.f32.gmra.mrb[2].mxu1 %vm238_vm1, %v7899_v63  ;;  %7100 = vmatmul.mubr.msk.f32.gmra.mrb[2].mxu0 %vm238_vm1, %v7940_v11 }
  0xab   : > { %6850 = vmatprep.mubr.msk.f32.mxu1 %vm238_vm1, %v7917_v3  ;;  %7102 = vmatprep.mubr.msk.f32.mxu0 %vm238_vm1, %v7946_v28 }
  0xae   : > { %6851 = vmatmul.mubr.msk.f32.gmra.mrb[4].mxu1 %vm238_vm1, %v7927_v10  ;;  %7103 = vmatmul.mubr.msk.f32.gmra.mrb[4].mxu0 %vm238_vm1, %v7960_v40  ;;  %v8789_v40 = vld [vmem:[#allocation19_spill] sm:$0xff] }
  0xaf   : > { %6853 = vmatprep.mubr.msk.f32.mxu1 %vm238_vm1, %v7943_v22  ;;  %7105 = vmatprep.mubr.msk.f32.mxu0 %vm238_vm1, %v8309_v59  ;;  %v5965_v59 = vld [vmem:[%s8682_s1 + $0x30] sm:$0xf] }
  0xb2   : > { %6854 = vmatmul.mubr.msk.f32.gmra.mrb[6].mxu1 %vm238_vm1, %v7949_v29  ;;  %7106 = vmatmul.mubr.msk.f32.gmra.mrb[6].mxu0 %vm238_vm1, %v6234_v1  ;;  %v6289_v1 = vld [vmem:[%s8682_s1 + $0x78] sm:$0xf] }
  0xb3   : > { %6858 = vmatprep.mubr.msk.f32.mxu1 %vm238_vm1, %v5921_v39  ;;  %7110 = vmatprep.mubr.msk.f32.mxu0 %vm238_vm1, %v7983_v42  ;;  %v8782_v39 = vld [vmem:[#allocation13_spill] sm:$0xff]  ;;  %v8785_v42 = vld [vmem:[#allocation20_spill] sm:$0xff] }
  0xb4   : > { %v8791_v29 = vld [vmem:[#allocation21_spill] sm:$0xff] }
  0xb6   : > { %6859 = vmatmul.mubr.msk.f32.vlgmr.msra.gmra.mrb[0].mxu1 %vm238_vm1, %v7967_v58  ;;  %7111 = vmatmul.mubr.msk.f32.vlgmr.msra.gmra.mrb[0].mxu0 %vm238_vm1, %v8781_v24  ;;  %v8783_v58 = vld [vmem:[#allocation18_spill] sm:$0xff]  ;;  %v8784_v24 = vld [vmem:[#allocation15_spill] sm:$0xff] }
  0xb7   : > { %6871 = vmatpush3.msk.msra.mxu1 %vm263_vm0, %v5947_v60  ;;  %7123 = vmatpush3.msk.msra.mxu0 %vm263_vm0, %v6271_v21  ;;  %v8786_v60 = vld [vmem:[#allocation17_spill] sm:$0xff]  ;;  %v8787_v21 = vld [vmem:[#allocation22_spill] sm:$0xff] }
  0xb8   : > { %6861 = vmatprep.mubr.msk.f32.mxu1 %vm238_vm1, %v8782_v39  ;;  %7113 = vmatprep.mubr.msk.f32.mxu0 %vm238_vm1, %v8783_v58  ;;  %v8354_v39 = vld [vmem:[%s7619_s27 + $0x82] sm:$0xff]  ;;  %v8790_v58 = vld [vmem:[#allocation24_spill] sm:$0xff] }
  0xb9   : > { %6884 = vmatprep.subr.msk.mxu1 %vm263_vm0, %v5965_v59  ;;  %7136 = vmatprep.subr.msk.mxu0 %vm263_vm0, %v6289_v1  ;;  %8788 = vst [vmem:[#allocation40_spill] sm:$0xff] %v8354_v39 }
  0xba   : > { %6862 = vmatmul.mubr.msk.f32.gmra.mrb[2].mxu1 %vm238_vm1, %v8784_v24  ;;  %7114 = vmatmul.mubr.msk.f32.gmra.mrb[2].mxu0 %vm238_vm1, %v8785_v42  ;;  %v6252_v42 = vld [vmem:[%s7619_s27 + $0x92] sm:$0xff]  ;;  %v5939_v24 = vld [vmem:[%s7619_s27 + $0x1e2] sm:$0xff] }
  0xbb   : > { %6864 = vmatprep.mubr.msk.f32.mxu1 %vm238_vm1, %v8786_v60  ;;  %7116 = vmatprep.mubr.msk.f32.mxu0 %vm238_vm1, %v8787_v21  ;;  %v8792_v60 = vld [vmem:[#allocation23_spill] sm:$0xff]  ;;  %v8793_v21 = vld [vmem:[#allocation29_spill] sm:$0xff] }
  0xbe   : > { %6865 = vmatmul.mubr.msk.f32.gmra.mrb[4].mxu1 %vm238_vm1, %v8789_v40  ;;  %7117 = vmatmul.mubr.msk.f32.gmra.mrb[4].mxu0 %vm238_vm1, %v8790_v58  ;;  %v8794_v58 = vld [vmem:[#allocation26_spill] sm:$0xff] }
  0xbf   : > { %6867 = vmatprep.mubr.msk.f32.mxu1 %vm238_vm1, %v8791_v29  ;;  %7119 = vmatprep.mubr.msk.f32.mxu0 %vm238_vm1, %v8354_v39  ;;  %v5983_v39 = vld [vmem:[%s8682_s1 + $0x34] sm:$0xf] }
  0xc2   : > { %6868 = vmatmul.mubr.msk.f32.gmra.mrb[6].mxu1 %vm238_vm1, %v8792_v60  ;;  %7120 = vmatmul.mubr.msk.f32.gmra.mrb[6].mxu0 %vm238_vm1, %v6252_v42  ;;  %v6307_v42 = vld [vmem:[%s8682_s1 + $0x7c] sm:$0xf] }
  0xc3   : > { %6872 = vmatprep.mubr.msk.f32.mxu1 %vm238_vm1, %v5939_v24  ;;  %7124 = vmatprep.mubr.msk.f32.mxu0 %vm238_vm1, %v8793_v21  ;;  %v8795_v24 = vld [vmem:[#allocation28_spill] sm:$0xff] }
  0xc4   : > { %v8798_v21 = vld [vmem:[#allocation32_spill] sm:$0xff] }
  0xc6   : > { %6873 = vmatmul.mubr.msk.f32.vlgmr.msra.gmra.mrb[0].mxu1 %vm238_vm1, %v8794_v58  ;;  %7125 = vmatmul.mubr.msk.f32.vlgmr.msra.gmra.mrb[0].mxu0 %vm238_vm1, %v8088_v57  ;;  %v8796_v58 = vld [vmem:[#allocation33_spill] sm:$0xff]  ;;  %v8797_v57 = vld [vmem:[#allocation30_spill] sm:$0xff] }
  0xc7   : > { %6885 = vmatpush3.msk.msra.mxu1 %vm263_vm0, %v5965_v59  ;;  %7137 = vmatpush3.msk.msra.mxu0 %vm263_vm0, %v6289_v1  ;;  %v8399_v59 = vld [vmem:[%s7619_s27 + $0x122] sm:$0xff] }
  0xc8   : > { %6875 = vmatprep.mubr.msk.f32.mxu1 %vm238_vm1, %v8795_v24  ;;  %7127 = vmatprep.mubr.msk.f32.mxu0 %vm238_vm1, %v8796_v58  ;;  %8799 = vst [vmem:[#allocation19_spill] sm:$0xff] %v8399_v59  ;;  %v8800_v1 = vld [vmem:[#allocation34_spill] sm:$0xff]  ;;  %v8801_v58 = vld [vmem:[#allocation37_spill] sm:$0xff] }
  0xc9   : > { %6898 = vmatprep.subr.msk.mxu1 %vm263_vm0, %v5983_v39  ;;  %7150 = vmatprep.subr.msk.mxu0 %vm263_vm0, %v6307_v42 }
  0xca   : > { %6876 = vmatmul.mubr.msk.f32.gmra.mrb[2].mxu1 %vm238_vm1, %v8797_v57  ;;  %7128 = vmatmul.mubr.msk.f32.gmra.mrb[2].mxu0 %vm238_vm1, %v8114_v46  ;;  %v6270_v46 = vld [vmem:[%s7619_s27 + $0x132] sm:$0xff] }
  0xcb   : > { %6878 = vmatprep.mubr.msk.f32.mxu1 %vm238_vm1, %v8798_v21  ;;  %7130 = vmatprep.mubr.msk.f32.mxu0 %vm238_vm1, %v8120_v0  ;;  %v8802_v0 = vld [vmem:[#allocation2_spill] sm:$0xff] }
  0xce   : > { %6879 = vmatmul.mubr.msk.f32.gmra.mrb[4].mxu1 %vm238_vm1, %v8800_v1  ;;  %7131 = vmatmul.mubr.msk.f32.gmra.mrb[4].mxu0 %vm238_vm1, %v8134_v6 }
  0xcf   : > { %6881 = vmatprep.mubr.msk.f32.mxu1 %vm238_vm1, %v8117_v47  ;;  %7133 = vmatprep.mubr.msk.f32.mxu0 %vm238_vm1, %v8399_v59  ;;  %v6001_v59 = vld [vmem:[%s8682_s1 + $0x38] sm:$0xf] }
  0xd2   : > { %6882 = vmatmul.mubr.msk.f32.gmra.mrb[6].mxu1 %vm238_vm1, %v8801_v58  ;;  %7134 = vmatmul.mubr.msk.f32.gmra.mrb[6].mxu0 %vm238_vm1, %v6270_v46  ;;  %v6325_v46 = vld [vmem:[%s8682_s1 + $0x80] sm:$0xf] }
  0xd3   : > { %6886 = vmatprep.mubr.msk.f32.mxu1 %vm238_vm1, %v8802_v0  ;;  %7138 = vmatprep.mubr.msk.f32.mxu0 %vm238_vm1, %v7632_v7  ;;  %v8803_v7 = vld [vmem:[#allocation3_spill] sm:$0xff] }
  0xd6   : > { %6887 = vmatmul.mubr.msk.f32.vlgmr.msra.gmra.mrb[0].mxu1 %vm238_vm1, %v7635_v8  ;;  %7139 = vmatmul.mubr.msk.f32.vlgmr.msra.gmra.mrb[0].mxu0 %vm238_vm1, %v7638_v9  ;;  %v6288_v8 = vld [vmem:[%s7619_s27 + $0x1d0] sm:$0xff] }
  0xd7   : > { %6899 = vmatpush3.msk.msra.mxu1 %vm263_vm0, %v5983_v39  ;;  %7151 = vmatpush3.msk.msra.mxu0 %vm263_vm0, %v6307_v42  ;;  %v8804_v9 = vld [vmem:[#allocation4_spill] sm:$0xff] }
  0xd8   : > { %6889 = vmatprep.mubr.msk.f32.mxu1 %vm238_vm1, %v7653_v12  ;;  %7141 = vmatprep.mubr.msk.f32.mxu0 %vm238_vm1, %v7656_v13  ;;  %v6019_v12 = vld [vmem:[%s8682_s1 + $0x3c] sm:$0xf]  ;;  %v6343_v13 = vld [vmem:[%s8682_s1 + $0x84] sm:$0xf] }
  0xd9   : > { %6912 = vmatprep.subr.msk.mxu1 %vm263_vm0, %v6001_v59  ;;  %7164 = vmatprep.subr.msk.mxu0 %vm263_vm0, %v6325_v46 }
  0xda   : > { %6890 = vmatmul.mubr.msk.f32.gmra.mrb[2].mxu1 %vm238_vm1, %v7663_v14  ;;  %7142 = vmatmul.mubr.msk.f32.gmra.mrb[2].mxu0 %vm238_vm1, %v7666_v15  ;;  %v8805_v14 = vld [vmem:[#allocation5_spill] sm:$0xff]  ;;  %v6306_v15 = vld [vmem:[%s7619_s27 + $0x270] sm:$0xff] }
  0xdb   : > { %6892 = vmatprep.mubr.msk.f32.mxu1 %vm238_vm1, %v7679_v16  ;;  %7144 = vmatprep.mubr.msk.f32.mxu0 %vm238_vm1, %v7682_v17  ;;  %v8806_v16 = vld [vmem:[#allocation6_spill] sm:$0xff] }
  0xdc   : > { %v6037_v17 = vld [vmem:[%s8682_s1 + $0x40] sm:$0xf] }
  0xde   : > { %6893 = vmatmul.mubr.msk.f32.gmra.mrb[4].mxu1 %vm238_vm1, %v7685_v18  ;;  %7145 = vmatmul.mubr.msk.f32.gmra.mrb[4].mxu0 %vm238_vm1, %v7688_v19  ;;  %v6361_v18 = vld [vmem:[%s8682_s1 + $0x88] sm:$0xf] }
  0xdf   : > { %6895 = vmatprep.mubr.msk.f32.mxu1 %vm238_vm1, %v7699_v20  ;;  %7147 = vmatprep.mubr.msk.f32.mxu0 %vm238_vm1, %v8803_v7  ;;  %v8807_v19 = vld [vmem:[#allocation7_spill] sm:$0xff]  ;;  %v6324_v20 = vld [vmem:[%s7619_s27 + $0x1d1] sm:$0xff] }
  0xe2   : > { %6896 = vmatmul.mubr.msk.f32.gmra.mrb[6].mxu1 %vm238_vm1, %v8174_v5  ;;  %7148 = vmatmul.mubr.msk.f32.gmra.mrb[6].mxu0 %vm238_vm1, %v6288_v8 }
  0xe3   : > { %6900 = vmatprep.mubr.msk.f32.mxu1 %vm238_vm1, %v8804_v9  ;;  %7152 = vmatprep.mubr.msk.f32.mxu0 %vm238_vm1, %v7719_v25  ;;  %v8808_v25 = vld [vmem:[#allocation8_spill] sm:$0xff] }
  0xe6   : > { %6901 = vmatmul.mubr.msk.f32.vlgmr.msra.gmra.mrb[0].mxu1 %vm238_vm1, %v7722_v26  ;;  %7153 = vmatmul.mubr.msk.f32.vlgmr.msra.gmra.mrb[0].mxu0 %vm238_vm1, %v7725_v27  ;;  %v6055_v26 = vld [vmem:[%s8682_s1 + $0x44] sm:$0xf]  ;;  %v6379_v27 = vld [vmem:[%s8682_s1 + $0x8c] sm:$0xf] }
  0xe7   : > { %6913 = vmatpush3.msk.msra.mxu1 %vm263_vm0, %v6001_v59  ;;  %7165 = vmatpush3.msk.msra.mxu0 %vm263_vm0, %v6325_v46 }
  0xe8   : > { %6903 = vmatprep.mubr.msk.f32.mxu1 %vm238_vm1, %v7740_v30  ;;  %7155 = vmatprep.mubr.msk.f32.mxu0 %vm238_vm1, %v7743_v31  ;;  %v8809_v30 = vld [vmem:[#allocation9_spill] sm:$0xff]  ;;  %v8810_v31 = vld [vmem:[#allocation10_spill] sm:$0xff] }
  0xe9   : > { %6926 = vmatprep.subr.msk.mxu1 %vm263_vm0, %v6019_v12  ;;  %7178 = vmatprep.subr.msk.mxu0 %vm263_vm0, %v6343_v13 }
  0xea   : > { %6904 = vmatmul.mubr.msk.f32.gmra.mrb[2].mxu1 %vm238_vm1, %v7750_v32  ;;  %7156 = vmatmul.mubr.msk.f32.gmra.mrb[2].mxu0 %vm238_vm1, %v7753_v33  ;;  %v8811_v32 = vld [vmem:[#allocation11_spill] sm:$0xff]  ;;  %v6342_v33 = vld [vmem:[%s7619_s27 + $0x271] sm:$0xff] }
  0xeb   : > { %6906 = vmatprep.mubr.msk.f32.mxu1 %vm238_vm1, %v7766_v34  ;;  %7158 = vmatprep.mubr.msk.f32.mxu0 %vm238_vm1, %v7769_v35  ;;  %v8812_v34 = vld [vmem:[#allocation39_spill] sm:$0xff]  ;;  %v8813_v35 = vld [vmem:[#allocation12_spill] sm:$0xff] }
  0xee   : > { %6907 = vmatmul.mubr.msk.f32.gmra.mrb[4].mxu1 %vm238_vm1, %v7772_v36  ;;  %7159 = vmatmul.mubr.msk.f32.gmra.mrb[4].mxu0 %vm238_vm1, %v7775_v37  ;;  %v8814_v36 = vld [vmem:[#allocation13_spill] sm:$0xff]  ;;  %v8815_v37 = vld [vmem:[#allocation14_spill] sm:$0xff] }
  0xef   : > { %6909 = vmatprep.mubr.msk.f32.mxu1 %vm238_vm1, %v7786_v38  ;;  %7161 = vmatprep.mubr.msk.f32.mxu0 %vm238_vm1, %v8805_v14  ;;  %v8816_v38 = vld [vmem:[#allocation15_spill] sm:$0xff] }
  0xf2   : > { %6910 = vmatmul.mubr.msk.f32.gmra.mrb[6].mxu1 %vm238_vm1, %v8219_v23  ;;  %7162 = vmatmul.mubr.msk.f32.gmra.mrb[6].mxu0 %vm238_vm1, %v6306_v15 }
  0xf3   : > { %6914 = vmatprep.mubr.msk.f32.mxu1 %vm238_vm1, %v8806_v16  ;;  %7166 = vmatprep.mubr.msk.f32.mxu0 %vm238_vm1, %v7806_v43  ;;  %v8817_v43 = vld [vmem:[#allocation16_spill] sm:$0xff] }
  0xf6   : > { %6915 = vmatmul.mubr.msk.f32.vlgmr.msra.gmra.mrb[0].mxu1 %vm238_vm1, %v7809_v44  ;;  %7167 = vmatmul.mubr.msk.f32.vlgmr.msra.gmra.mrb[0].mxu0 %vm238_vm1, %v7812_v45  ;;  %v8818_v44 = vld [vmem:[#allocation17_spill] sm:$0xff]  ;;  %v8819_v45 = vld [vmem:[#allocation18_spill] sm:$0xff] }
  0xf7   : > { %6927 = vmatpush3.msk.msra.mxu1 %vm263_vm0, %v6019_v12  ;;  %7179 = vmatpush3.msk.msra.mxu0 %vm263_vm0, %v6343_v13 }
  0xf8   : > { %6917 = vmatprep.mubr.msk.f32.mxu1 %vm238_vm1, %v7827_v48  ;;  %7169 = vmatprep.mubr.msk.f32.mxu0 %vm238_vm1, %v7830_v49  ;;  %v8820_v48 = vld [vmem:[#allocation20_spill] sm:$0xff]  ;;  %v8821_v49 = vld [vmem:[#allocation22_spill] sm:$0xff] }
  0xf9   : > { %6940 = vmatprep.subr.msk.mxu1 %vm263_vm0, %v6037_v17  ;;  %7192 = vmatprep.subr.msk.mxu0 %vm263_vm0, %v6361_v18 }
  0xfa   : > { %6918 = vmatmul.mubr.msk.f32.gmra.mrb[2].mxu1 %vm238_vm1, %v7837_v50  ;;  %7170 = vmatmul.mubr.msk.f32.gmra.mrb[2].mxu0 %vm238_vm1, %v7840_v51  ;;  %v8822_v50 = vld [vmem:[#allocation24_spill] sm:$0xff]  ;;  %v8823_v51 = vld [vmem:[#allocation25_spill] sm:$0xff] }
  0xfb   : > { %6920 = vmatprep.mubr.msk.f32.mxu1 %vm238_vm1, %v7853_v52  ;;  %7172 = vmatprep.mubr.msk.f32.mxu0 %vm238_vm1, %v7856_v53  ;;  %v6360_v52 = vld [vmem:[%s7619_s27 + $0x1d2] sm:$0xff] }
  0xfc   : > { %v8824_v53 = vld [vmem:[#allocation40_spill] sm:$0xff] }
  0xfe   : > { %6921 = vmatmul.mubr.msk.f32.gmra.mrb[4].mxu1 %vm238_vm1, %v7859_v54  ;;  %7173 = vmatmul.mubr.msk.f32.gmra.mrb[4].mxu0 %vm238_vm1, %v7862_v55  ;;  %v8825_v54 = vld [vmem:[#allocation27_spill] sm:$0xff]  ;;  %v8826_v55 = vld [vmem:[#allocation29_spill] sm:$0xff] }
  0xff   : > { %6923 = vmatprep.mubr.msk.f32.mxu1 %vm238_vm1, %v7873_v56  ;;  %7175 = vmatprep.mubr.msk.f32.mxu0 %vm238_vm1, %v8807_v19  ;;  %v8827_v56 = vld [vmem:[#allocation31_spill] sm:$0xff] }
 0x102   : > { %6924 = vmatmul.mubr.msk.f32.gmra.mrb[6].mxu1 %vm238_vm1, %v8264_v41  ;;  %7176 = vmatmul.mubr.msk.f32.gmra.mrb[6].mxu0 %vm238_vm1, %v6324_v20 }
 0x103   : > { %6928 = vmatprep.mubr.msk.f32.mxu1 %vm238_vm1, %v8808_v25  ;;  %7180 = vmatprep.mubr.msk.f32.mxu0 %vm238_vm1, %v7893_v61  ;;  %v8828_v61 = vld [vmem:[#allocation33_spill] sm:$0xff] }
 0x106   : > { %6929 = vmatmul.mubr.msk.f32.vlgmr.msra.gmra.mrb[0].mxu1 %vm238_vm1, %v7896_v62  ;;  %7181 = vmatmul.mubr.msk.f32.vlgmr.msra.gmra.mrb[0].mxu0 %vm238_vm1, %v7899_v63  ;;  %v8829_v62 = vld [vmem:[#allocation35_spill] sm:$0xff]  ;;  %v8830_v63 = vld [vmem:[#allocation36_spill] sm:$0xff] }
 0x107   : > { %6941 = vmatpush3.msk.msra.mxu1 %vm263_vm0, %v6037_v17  ;;  %7193 = vmatpush3.msk.msra.mxu0 %vm263_vm0, %v6361_v18 }
 0x108   : > { %6931 = vmatprep.mubr.msk.f32.mxu1 %vm238_vm1, %v7914_v2  ;;  %7183 = vmatprep.mubr.msk.f32.mxu0 %vm238_vm1, %v7917_v3  ;;  %v6378_v2 = vld [vmem:[%s7619_s27 + $0x272] sm:$0xff]  ;;  %v8832_v3 = vld [vmem:[#allocation19_spill] sm:$0xff] }
 0x109   : > { %6954 = vmatprep.subr.msk.mxu1 %vm263_vm0, %v6055_v26  ;;  %7206 = vmatprep.subr.msk.mxu0 %vm263_vm0, %v6379_v27 }
 0x10a   : > { %6932 = vmatmul.mubr.msk.f32.gmra.mrb[2].mxu1 %vm238_vm1, %v7924_v4  ;;  %7184 = vmatmul.mubr.msk.f32.gmra.mrb[2].mxu0 %vm238_vm1, %v7927_v10  ;;  %v5765_v4 = vld [vmem:[%s8683_s2] ss:$0 sm:$0xff] }
 0x10b   : > { %6934 = vmatprep.mubr.msk.f32.mxu1 %vm238_vm1, %v7940_v11  ;;  %7186 = vmatprep.mubr.msk.f32.mxu0 %vm238_vm1, %v7943_v22 }
 0x10e   : > { %6935 = vmatmul.mubr.msk.f32.gmra.mrb[4].mxu1 %vm238_vm1, %v7946_v28  ;;  %7187 = vmatmul.mubr.msk.f32.gmra.mrb[4].mxu0 %vm238_vm1, %v8809_v30 }
 0x10f   : > { %6937 = vmatprep.mubr.msk.f32.mxu1 %vm238_vm1, %v8810_v31  ;;  %7189 = vmatprep.mubr.msk.f32.mxu0 %vm238_vm1, %v8811_v32 }
 0x112   : > { %6938 = vmatmul.mubr.msk.f32.gmra.mrb[6].mxu1 %vm238_vm1, %v8812_v34  ;;  %7190 = vmatmul.mubr.msk.f32.gmra.mrb[6].mxu0 %vm238_vm1, %v6342_v33 }
 0x113   : > { %6942 = vmatprep.mubr.msk.f32.mxu1 %vm238_vm1, %v8813_v35  ;;  %7194 = vmatprep.mubr.msk.f32.mxu0 %vm238_vm1, %v8814_v36 }
 0x116   : > { %6943 = vmatmul.mubr.msk.f32.vlgmr.msra.gmra.mrb[0].mxu1 %vm238_vm1, %v8815_v37  ;;  %7195 = vmatmul.mubr.msk.f32.vlgmr.msra.gmra.mrb[0].mxu0 %vm238_vm1, %v8816_v38 }
 0x117   : > { %6955 = vmatpush3.msk.msra.mxu1 %vm263_vm0, %v6055_v26  ;;  %7207 = vmatpush3.msk.msra.mxu0 %vm263_vm0, %v6379_v27 }
 0x118   : > { %6945 = vmatprep.mubr.msk.f32.mxu1 %vm238_vm1, %v8817_v43  ;;  %7197 = vmatprep.mubr.msk.f32.mxu0 %vm238_vm1, %v8818_v44 }
 0x11a   : > { %6946 = vmatmul.mubr.msk.f32.gmra.mrb[2].mxu1 %vm238_vm1, %v8819_v45  ;;  %7198 = vmatmul.mubr.msk.f32.gmra.mrb[2].mxu0 %vm238_vm1, %v8789_v40 }
 0x11b   : > { %6948 = vmatprep.mubr.msk.f32.mxu1 %vm238_vm1, %v8820_v48  ;;  %7200 = vmatprep.mubr.msk.f32.mxu0 %vm238_vm1, %v8791_v29 }
 0x11e   : > { %6949 = vmatmul.mubr.msk.f32.gmra.mrb[4].mxu1 %vm238_vm1, %v8821_v49  ;;  %7201 = vmatmul.mubr.msk.f32.gmra.mrb[4].mxu0 %vm238_vm1, %v8792_v60 }
 0x11f   : > { %6951 = vmatprep.mubr.msk.f32.mxu1 %vm238_vm1, %v8822_v50  ;;  %7203 = vmatprep.mubr.msk.f32.mxu0 %vm238_vm1, %v8823_v51 }
 0x122   : > { %6952 = vmatmul.mubr.msk.f32.gmra.mrb[6].mxu1 %vm238_vm1, %v8824_v53  ;;  %7204 = vmatmul.mubr.msk.f32.gmra.mrb[6].mxu0 %vm238_vm1, %v6360_v52 }
 0x123   : > { %6956 = vmatprep.mubr.msk.f32.mxu1 %vm238_vm1, %v8825_v54  ;;  %7208 = vmatprep.mubr.msk.f32.mxu0 %vm238_vm1, %v8795_v24 }
 0x126   : > { %6957 = vmatmul.mubr.msk.f32.vlgmr.msra.gmra.mrb[0].mxu1 %vm238_vm1, %v8826_v55  ;;  %7209 = vmatmul.mubr.msk.f32.vlgmr.msra.gmra.mrb[0].mxu0 %vm238_vm1, %v8797_v57  ;;  %v8831_v57 = vld [vmem:[#allocation38_spill] sm:$0xff] }
 0x127   : > { %6959 = vmatprep.mubr.msk.f32.mxu1 %vm238_vm1, %v8827_v56  ;;  %7211 = vmatprep.mubr.msk.f32.mxu0 %vm238_vm1, %v8798_v21 }
 0x12a   : > { %6960 = vmatmul.mubr.msk.f32.gmra.mrb[2].mxu1 %vm238_vm1, %v8828_v61  ;;  %7212 = vmatmul.mubr.msk.f32.gmra.mrb[2].mxu0 %vm238_vm1, %v8800_v1 }
 0x12b   : > { %6962 = vmatprep.mubr.msk.f32.mxu1 %vm238_vm1, %v8829_v62  ;;  %7214 = vmatprep.mubr.msk.f32.mxu0 %vm238_vm1, %v8117_v47 }
 0x12e   : > { %6963 = vmatmul.mubr.msk.f32.gmra.mrb[4].mxu1 %vm238_vm1, %v8830_v63  ;;  %7215 = vmatmul.mubr.msk.f32.gmra.mrb[4].mxu0 %vm238_vm1, %v8801_v58 }
 0x12f   : > { %6965 = vmatprep.mubr.msk.f32.mxu1 %vm238_vm1, %v8134_v6  ;;  %7217 = vmatprep.mubr.msk.f32.mxu0 %vm238_vm1, %v8831_v57 }
 0x132   : > { %6966 = vmatmul.mubr.msk.f32.gmra.mrb[6].mxu1 %vm238_vm1, %v8832_v3  ;;  %7218 = vmatmul.mubr.msk.f32.gmra.mrb[6].mxu0 %vm238_vm1, %v6378_v2 }
 0x1f9   : > { %v6958_v10 = vpop.f32.mrb[0].mxu1  ;;  %v7210_v11 = vpop.f32.mrb[0].mxu0 }
 0x1fa   : > { %v7220_v22 = vadd.f32 %v6958_v10, %v5765_v4  ;;  %v2888_v28 = vpop.f32.mrb[1].mxu1  ;;  %v5594_v29 = vpop.f32.mrb[1].mxu0 }
 0x1fb   : > { %v7222_v6 = vadd.f32 %v5765_v4, %v2888_v28 }
 0x1fc   : > { %v7221_v40 = vadd.f32 %v7220_v22, %v7210_v11 }
 0x1fd   : > { %v7223_v0 = vadd.f32 %v7222_v6, %v5594_v29  ;;  %v6961_v47 = vpop.f32.mrb[2].mxu1  ;;  %v7213_v5 = vpop.f32.mrb[2].mxu0 }
 0x1fe   : > { %5643 = vst.msk [vmem:[%s8654_s4 + $0x8] sm:$0xff] %vm5641_vm2, %v7221_v40  ;;  %v7224_v23 = vadd.f32 %v6961_v47, %v5765_v4  ;;  %v2898_v41 = vpop.f32.mrb[3].mxu1  ;;  %v5604_v39 = vpop.f32.mrb[3].mxu0 }
 0x1ff   : > { %5642 = vst.msk [vmem:[%s8654_s4] sm:$0xff] %vm5641_vm2, %v7223_v0  ;;  %v7226_v60 = vadd.f32 %v5765_v4, %v2898_v41 }
 0x200   : > { %v7225_v21 = vadd.f32 %v7224_v23, %v7213_v5 }
 0x201   : > { %v7227_v42 = vadd.f32 %v7226_v60, %v5604_v39  ;;  %v6964_v24 = vpop.f32.mrb[4].mxu1  ;;  %v7216_v58 = vpop.f32.mrb[4].mxu0 }
 0x202   : > { %5645 = vst.msk [vmem:[%s8654_s4 + $0x18] sm:$0xff] %vm5641_vm2, %v7225_v21  ;;  %v7228_v59 = vadd.f32 %v6964_v24, %v5765_v4  ;;  %v2908_v1 = vpop.f32.mrb[5].mxu1  ;;  %v5614_v46 = vpop.f32.mrb[5].mxu0 }
 0x203   : > { %5644 = vst.msk [vmem:[%s8654_s4 + $0x10] sm:$0xff] %vm5641_vm2, %v7227_v42  ;;  %v7230_v7 = vadd.f32 %v5765_v4, %v2908_v1 }
 0x204   : > { %v7229_v8 = vadd.f32 %v7228_v59, %v7216_v58 }
 0x205   : > { %v7231_v9 = vadd.f32 %v7230_v7, %v5614_v46  ;;  %v6967_v12 = vpop.f32.mrb[6].mxu1  ;;  %v7219_v13 = vpop.f32.mrb[6].mxu0 }
 0x206   : > { %5647 = vst.msk [vmem:[%s8654_s4 + $0x28] sm:$0xff] %vm5641_vm2, %v7229_v8  ;;  %v7232_v14 = vadd.f32 %v6967_v12, %v5765_v4  ;;  %v2918_v15 = vpop.f32.mrb[7].mxu1  ;;  %v5624_v16 = vpop.f32.mrb[7].mxu0 }
 0x207   : > { %5646 = vst.msk [vmem:[%s8654_s4 + $0x20] sm:$0xff] %vm5641_vm2, %v7231_v9  ;;  %v7234_v17 = vadd.f32 %v5765_v4, %v2918_v15 }
 0x208   : > { %v7233_v18 = vadd.f32 %v7232_v14, %v7219_v13 }
 0x209   : > { %v7235_v19 = vadd.f32 %v7234_v17, %v5624_v16 }
 0x20a   : > { %5649 = vst.msk [vmem:[%s8654_s4 + $0x38] sm:$0xff] %vm5641_vm2, %v7233_v18 }
 0x20b   : > { %5648 = vst.msk [vmem:[%s8654_s4 + $0x30] sm:$0xff] %vm5641_vm2, %v7235_v19 }
 0x20c PF: > { %s13_s14 = sadd.s32 1, %s7555_s14   ;;  %s8833_s12 = smov %s7551_s13 }
 0x20d   : > { %p10_p5 = scmp.ge.s32.totalorder %s13_s14, 4   ;;  %s8834_s13 = smov %s8836_s15 }
 0x20f   :  { %12 = sbr.rel (!%p10_p5) target bundleno = 2 (0x2), region = 114 }

</bundles_post_ra>
